<compile_context>
chip_gen: v6e
topology: v6e:2x2x1
jax: 0.10.0
libtpu: 0.0.40
codegen_flags: <defaults>
</compile_context>

<pallas_src>
import math
import jax
import jax.numpy as jnp
from jax.experimental import pallas as pl
from jax.experimental.pallas import tpu as pltpu


# ----------------------------------------------------------------------------
# In-kernel helper: training-mode BatchNorm2d + ReLU on a per-sample NHWC-flat
# activation slab y of shape (N_pad, S*C)  (flat column index = s*C + c).
#   pc : (S*C, C) 0/1 channel selector (per-channel gather via one MXU push)
#   row_mask : (N_pad, 1) 1.0 for real batch rows, 0.0 for padded rows
# One-pass stats in f32; channel broadcast of scale/shift is a lane-tile.
# ----------------------------------------------------------------------------
def _bn_relu(y, row_mask, g_row, b_row, pc, S, n_real):
    f32 = jnp.float32
    y = y * row_mask                                                  # zero padded batch rows
    colsum = jnp.sum(y, axis=0, keepdims=True)                        # (1, S*C) sublane reduce
    colsumsq = jnp.sum(y * y, axis=0, keepdims=True)
    sums = jnp.concatenate([colsum, colsumsq], axis=0)                # (2, S*C)
    stats = jnp.dot(sums, pc, preferred_element_type=f32)             # (2, C) one MXU push
    stats = stats * (1.0 / (n_real * S))
    mean = stats[0:1]
    var = stats[1:2] - mean * mean                                    # biased batch variance
    inv = jax.lax.rsqrt(var + 1e-5)
    scale = g_row * inv                                               # (1, C)
    shift = b_row - mean * scale
    scale_f = jnp.tile(scale, (1, S))                                 # (1, S*C) lane tile
    shift_f = jnp.tile(shift, (1, S))
    return jnp.maximum(y * scale_f + shift_f, 0.0)


def _make_decoder_kernel(n_blocks, n_real, dim):
    """Single fused kernel: the whole decoder forward, everything resident in VMEM."""

    def kernel(*refs):
        (x_ref, eps_ref, mlw_ref, mlb_ref, t2d_ref,
         g0_ref, b0_ref, pc0_ref) = refs[:8]
        i = 8
        blocks = []
        for _ in range(n_blocks):
            blocks.append(refs[i:i + 4])          # (bigW, gamma, beta, pc)
            i += 4
        wrgb_ref, brgb_ref = refs[i], refs[i + 1]
        out_ref = refs[i + 2]

        f32, bf16 = jnp.float32, jnp.bfloat16
        n_pad = x_ref.shape[0]

        # Row mask for the padded batch rows (keeps BN batch stats exact).
        rows = jax.lax.broadcasted_iota(jnp.int32, (n_pad, 1), 0)
        row_mask = (rows < n_real).astype(f32)

        # AdaptiveAvgPool2d(1) + Flatten: plain lane reduction over H*W (no pooling matrix).
        pooled = jnp.mean(x_ref[...], axis=-1)                        # (N_pad, dim) f32

        # Fused mean|logvar linear: ONE MXU push, split by lane slice (kept in f32: tiny).
        ml = jnp.dot(pooled, mlw_ref[...], preferred_element_type=f32) + mlb_ref[...]
        mu = ml[:, :dim]
        logvar = ml[:, dim:]

        # Reparameterize (exp rides the EUP slot).
        z = mu + eps_ref[...] * jnp.exp(0.5 * logvar)                 # (N_pad, dim)

        # to2d: Linear(dim, 4*dim, bias=False) with columns pre-permuted to NHWC-flat,
        # bf16 weights / bf16 input, f32 accumulate, fused BN+ReLU in f32.
        h = jnp.dot(z.astype(bf16), t2d_ref[...], preferred_element_type=f32)
        S = 4
        h = _bn_relu(h, row_mask, g0_ref[...], b0_ref[...], pc0_ref[...], S, n_real)

        # Upsampling blocks: each ConvTranspose2d(4,2,1) is ONE dense bf16 matmul against a
        # precomputed weight matrix, immediately followed by fused BN+ReLU (f32).
        for (w_ref, g_ref, b_ref, pc_ref) in blocks:
            h = jnp.dot(h.astype(bf16), w_ref[...], preferred_element_type=f32)
            S *= 4
            h = _bn_relu(h, row_mask, g_ref[...], b_ref[...], pc_ref[...], S, n_real)

        # Final 1x1 conv to RGB, emitted directly in NCHW-per-sample-flat layout.
        rgb = jnp.dot(h.astype(bf16), wrgb_ref[...], preferred_element_type=f32) + brgb_ref[...]

        # Lane-dense combined output slab: [ out_flat (3*T*T) | mu (dim) | logvar (dim) ].
        out_ref[...] = jnp.concatenate([rgb, mu, logvar], axis=1)

    return kernel


# ----------------------------------------------------------------------------
# Wrapper-side (one-time) weight / layout preparation
# ----------------------------------------------------------------------------
def _full_block(shape):
    n = len(shape)
    return pl.BlockSpec(shape, lambda i, n=n: (0,) * n)


def _channel_selector(S, C):
    # pc[s*C + c, c] = 1  -> per-channel gather on an NHWC-flat slab via one MXU push.
    eye = jnp.eye(C, dtype=jnp.float32)
    return jnp.tile(eye, (1, S)).T            # (S*C, C)


def _build_deconv_matrix(w_ct, H, W):
    # ConvTranspose2d(Cin, Cout, 4, 2, 1, bias=False) as a dense matmul on
    # NHWC-per-sample-flat activations:  (N, H*W*Cin) @ M -> (N, Ho*Wo*Cout)
    #   M[(i*W+j)*Cin+ci, (oy*Wo+ox)*Cout+co] = w[ci, co, oy-2i+1, ox-2j+1]  (valid taps)
    Cin, Cout = w_ct.shape[0], w_ct.shape[1]
    Ho, Wo = 2 * H, 2 * W
    ky = jnp.arange(Ho)[None, :] - 2 * jnp.arange(H)[:, None] + 1      # (H, Ho)
    kx = jnp.arange(Wo)[None, :] - 2 * jnp.arange(W)[:, None] + 1      # (W, Wo)
    vy = (ky >= 0) & (ky < 4)
    vx = (kx >= 0) & (kx < 4)
    taps = w_ct[:, :, jnp.clip(ky, 0, 3)[:, :, None, None],
                      jnp.clip(kx, 0, 3)[None, None, :, :]]            # (Cin,Cout,H,Ho,W,Wo)
    mask = (vy[:, :, None, None] & vx[None, None, :, :]).astype(w_ct.dtype)
    taps = taps * mask[None, None]
    m = jnp.transpose(taps, (2, 4, 0, 3, 5, 1))                        # (H,W,Cin,Ho,Wo,Cout)
    return m.reshape(H * W * Cin, Ho * Wo * Cout)


def _build_rgb_matrix(w_rgb, S):
    # Conv2d(Cin, Cout, 1) as a dense matmul producing NCHW-per-sample-flat output:
    #   M[s*Cin + ci, co*S + s] = w[co, ci]
    Cout, Cin = w_rgb.shape[0], w_rgb.shape[1]
    w2 = w_rgb.reshape(Cout, Cin)
    eye = jnp.eye(S, dtype=w_rgb.dtype)
    return jnp.einsum("st,oc->scot", eye, w2).reshape(S * Cin, Cout * S)


def precompute_decoder_operands(params, x_shape):
    """One-time layout/weight prep (outside the per-forward hot path)."""
    N, C, H, W = x_shape
    dim = params["dimension"]
    assert C == dim, "input channel count must equal `dimension`"
    bf16 = jnp.bfloat16

    # Fused mean|logvar linear (one matmul in-kernel, split by lane slice).
    ml_w = jnp.concatenate([params["mean_w"], params["logvar_w"]], axis=1)          # (dim, 2dim)
    ml_b = jnp.concatenate([params["mean_b"], params["logvar_b"]]).reshape(1, 2 * dim)

    # to2d weight: permute columns from torch's (c*4 + s) order to NHWC-flat (s*dim + c).
    t2d_perm = (params["to2d_w"].reshape(dim, dim, 4)
                .transpose(0, 2, 1).reshape(dim, 4 * dim)).astype(bf16)

    ops = [ml_w, ml_b, t2d_perm,
           params["to2d_bn_g"].reshape(1, dim), params["to2d_bn_b"].reshape(1, dim),
           _channel_selector(4, dim)]

    sp = 2
    for (w_ct, g, b) in params["blocks"]:
        cout = w_ct.shape[1]
        ops.append(_build_deconv_matrix(w_ct, sp, sp).astype(bf16))
        sp *= 2
        s = sp * sp
        ops += [g.reshape(1, cout), b.reshape(1, cout), _channel_selector(s, cout)]

    T = sp
    S = T * T
    ops.append(_build_rgb_matrix(params["rgb_w"], S).astype(bf16))
    ops.append(jnp.repeat(params["rgb_b"], S).reshape(1, 3 * S))
    meta = dict(n_blocks=len(params["blocks"]), T=T, dim=dim)
    return ops, meta


def vae_decoder2d_forward(x_nchw, eps, static_ops, meta):
    N, C, H, W = x_nchw.shape
    dim, T, nb = meta["dim"], meta["T"], meta["n_blocks"]
    n_pad = max(8, ((N + 7) // 8) * 8)             # full-sublane M for matmuls and stores

    # NCHW -> (N_pad, C, H*W); zero-padded rows are masked out of BN stats in-kernel.
    x3 = jnp.pad(x_nchw.reshape(N, C, H * W), ((0, n_pad - N), (0, 0), (0, 0)))
    eps_p = jnp.pad(eps, ((0, n_pad - N), (0, 0)))

    out_cols = 3 * T * T + 2 * dim                 # combined lane-dense output slab width
    args = [x3, eps_p] + list(static_ops)

    vmem_bytes = sum(int(a.size) * a.dtype.itemsize for a in args) + n_pad * out_cols * 4
    vmem_limit = min(int(2 * vmem_bytes) + (8 << 20), 100 << 20)

    slab = pl.pallas_call(
        _make_decoder_kernel(nb, N, dim),
        grid=(1,),
        in_specs=[_full_block(a.shape) for a in args],
        out_specs=_full_block((n_pad, out_cols)),
        out_shape=jax.ShapeDtypeStruct((n_pad, out_cols), jnp.float32),
        compiler_params=pltpu.CompilerParams(
            dimension_semantics=("arbitrary",),
            vmem_limit_bytes=vmem_limit),
    )(*args)

    out_nchw = slab[:N, :3 * T * T].reshape(N, 3, T, T)   # NCHW-flat -> NCHW (contiguous, free)
    mu = slab[:N, 3 * T * T:3 * T * T + dim]
    logvar = slab[:N, 3 * T * T + dim:]
    return out_nchw, mu, logvar


# ----------------------------------------------------------------------------
# Deterministic synthetic parameters (torch-equivalent layouts, x @ w convention)
# ----------------------------------------------------------------------------
def init_params(key, target_size, dimension):
    n_blocks = int(math.log2(target_size) - 1)
    keys = jax.random.split(key, 6 + n_blocks + 2)
    s = 0.05
    params = {
        "dimension": dimension,
        "mean_w": s * jax.random.normal(keys[0], (dimension, dimension), jnp.float32),
        "mean_b": s * jax.random.normal(keys[1], (dimension,), jnp.float32),
        "logvar_w": s * jax.random.normal(keys[2], (dimension, dimension), jnp.float32),
        "logvar_b": s * jax.random.normal(keys[3], (dimension,), jnp.float32),
        "to2d_w": s * jax.random.normal(keys[4], (dimension, dimension * 4), jnp.float32),
        "to2d_bn_g": jnp.ones((dimension,), jnp.float32),
        "to2d_bn_b": jnp.zeros((dimension,), jnp.float32),
    }
    blocks = []
    cur = dimension
    for i in range(n_blocks):
        w_ct = s * jax.random.normal(keys[5 + i], (cur, cur // 2, 4, 4), jnp.float32)
        blocks.append((w_ct, jnp.ones((cur // 2,), jnp.float32),
                       jnp.zeros((cur // 2,), jnp.float32)))
        cur = cur // 2
    params["blocks"] = blocks
    params["rgb_w"] = s * jax.random.normal(keys[5 + n_blocks], (3, cur, 1, 1), jnp.float32)
    params["rgb_b"] = s * jax.random.normal(keys[6 + n_blocks], (3,), jnp.float32)
    return params


# ----------------------------------------------------------------------------
# Plain-JAX reference (no Pallas) — used only to validate the fused kernel.
# ----------------------------------------------------------------------------
def _ref_bn_relu_nhwc(h_nhwc, g, b):
    C = h_nhwc.shape[-1]
    x = h_nhwc.reshape(-1, C)
    mean = jnp.mean(x, axis=0)
    var = jnp.mean((x - mean) ** 2, axis=0)
    y = (x - mean) * jax.lax.rsqrt(var + 1e-5) * g + b
    return jnp.maximum(y, 0.0).reshape(h_nhwc.shape)


def _ref_deconv_s2k4p1(x_nhwc, w_ct):
    N, H, W, Cin = x_nhwc.shape
    Cout = w_ct.shape[1]
    y = jnp.einsum("nhwi,iokl->nhwokl", x_nhwc, w_ct)
    Ho, Wo = 2 * H, 2 * W
    out = jnp.zeros((N, Ho + 2, Wo + 2, Cout), jnp.float32)
    for ky in range(4):
        for kx in range(4):
            out = out.at[:, ky:ky + Ho:2, kx:kx + Wo:2, :].add(y[..., ky, kx])
    return out[:, 1:Ho + 1, 1:Wo + 1, :]


def reference_forward(x_nchw, params, eps):
    N = x_nchw.shape[0]
    dim = params["dimension"]
    pooled = jnp.mean(x_nchw.reshape(N, dim, -1), axis=-1)
    mu = pooled @ params["mean_w"] + params["mean_b"]
    logvar = pooled @ params["logvar_w"] + params["logvar_b"]
    z = mu + eps * jnp.exp(0.5 * logvar)
    z4 = z @ params["to2d_w"]
    h = jnp.transpose(z4.reshape(N, dim, 2, 2), (0, 2, 3, 1))
    h = _ref_bn_relu_nhwc(h, params["to2d_bn_g"], params["to2d_bn_b"])
    for (w_ct, g, b) in params["blocks"]:
        h = _ref_deconv_s2k4p1(h, w_ct)
        h = _ref_bn_relu_nhwc(h, g, b)
    out = jnp.einsum("nhwc,oc->nhwo", h, params["rgb_w"].reshape(3, -1)) + params["rgb_b"]
    return jnp.transpose(out, (0, 3, 1, 2)), mu, logvar


if __name__ == "__main__":
    target_size = 8      # -> 2 upsampling blocks (log2(8) - 1), spatial 2 -> 4 -> 8
    dimension = 32       # channels 32 -> 16 -> 8 -> 3
    batch = 2

    key = jax.random.PRNGKey(0)
    k_x, k_eps, k_p = jax.random.split(key, 3)
    x = jax.random.normal(k_x, (batch, dimension, 8, 8), jnp.float32)   # NCHW input
    eps = jax.random.normal(k_eps, (batch, dimension), jnp.float32)
    params = init_params(k_p, target_size, dimension)

    # One-time wrapper-side weight / layout preparation (outside the hot path).
    static_ops, meta = precompute_decoder_operands(params, x.shape)

    out, mu, logvar = vae_decoder2d_forward(x, eps, static_ops, meta)
    jax.block_until_ready(out)
    jax.block_until_ready(mu)
    jax.block_until_ready(logvar)

    assert out.shape == (batch, 3, target_size, target_size), out.shape
    assert mu.shape == (batch, dimension) and logvar.shape == (batch, dimension)
    assert bool(jnp.all(jnp.isfinite(out)))

    # Validate the fused kernel against the plain-JAX reference of the module.
    # mu/logvar path is f32 (tight tolerance); the decode path uses bf16 MXU weights
    # with f32 accumulation / f32 BatchNorm stats (looser tolerance).
    out_ref, mu_ref, lv_ref = reference_forward(x, params, eps)
    d_out = float(jnp.max(jnp.abs(out - out_ref)))
    d_mu = float(jnp.max(jnp.abs(mu - mu_ref)))
    d_lv = float(jnp.max(jnp.abs(logvar - lv_ref)))
    assert d_mu < 1e-2 and d_lv < 1e-2, (d_mu, d_lv)
    assert d_out < 1e-1, d_out

    print("KERNEL_OK")
</pallas_src>

<mosaic_0001>
module attributes {stable_mosaic.version = 11 : i64} {
  func.func @kernel(%arg0: i32, %arg1: memref<8x32x64xf32, #tpu.memory_space<vmem>>, %arg2: memref<8x32xf32, #tpu.memory_space<vmem>>, %arg3: memref<32x64xf32, #tpu.memory_space<vmem>>, %arg4: memref<1x64xf32, #tpu.memory_space<vmem>>, %arg5: memref<32x128xbf16, #tpu.memory_space<vmem>>, %arg6: memref<1x32xf32, #tpu.memory_space<vmem>>, %arg7: memref<1x32xf32, #tpu.memory_space<vmem>>, %arg8: memref<128x32xf32, #tpu.memory_space<vmem>>, %arg9: memref<128x256xbf16, #tpu.memory_space<vmem>>, %arg10: memref<1x16xf32, #tpu.memory_space<vmem>>, %arg11: memref<1x16xf32, #tpu.memory_space<vmem>>, %arg12: memref<256x16xf32, #tpu.memory_space<vmem>>, %arg13: memref<256x512xbf16, #tpu.memory_space<vmem>>, %arg14: memref<1x8xf32, #tpu.memory_space<vmem>>, %arg15: memref<1x8xf32, #tpu.memory_space<vmem>>, %arg16: memref<512x8xf32, #tpu.memory_space<vmem>>, %arg17: memref<512x192xbf16, #tpu.memory_space<vmem>>, %arg18: memref<1x192xf32, #tpu.memory_space<vmem>>, %arg19: memref<8x256xf32, #tpu.memory_space<vmem>>) attributes {dimension_semantics = [#tpu.dimension_semantics<arbitrary>], iteration_bounds = array<i64: 1>, scalar_prefetch = 0 : i64, scratch_operands = 0 : i64, tpu.core_type = #tpu.core_type<tc>, window_params = [{pipeline_mode = #tpu.pipeline_mode<synchronous>, transform_indices = @transform_0, window_bounds = array<i64: 8, 32, 64>}, {pipeline_mode = #tpu.pipeline_mode<synchronous>, transform_indices = @transform_1, window_bounds = array<i64: 8, 32>}, {pipeline_mode = #tpu.pipeline_mode<synchronous>, transform_indices = @transform_2, window_bounds = array<i64: 32, 64>}, {pipeline_mode = #tpu.pipeline_mode<synchronous>, transform_indices = @transform_3, window_bounds = array<i64: 1, 64>}, {pipeline_mode = #tpu.pipeline_mode<synchronous>, transform_indices = @transform_4, window_bounds = array<i64: 32, 128>}, {pipeline_mode = #tpu.pipeline_mode<synchronous>, transform_indices = @transform_5, window_bounds = array<i64: 1, 32>}, {pipeline_mode = #tpu.pipeline_mode<synchronous>, transform_indices = @transform_6, window_bounds = array<i64: 1, 32>}, {pipeline_mode = #tpu.pipeline_mode<synchronous>, transform_indices = @transform_7, window_bounds = array<i64: 128, 32>}, {pipeline_mode = #tpu.pipeline_mode<synchronous>, transform_indices = @transform_8, window_bounds = array<i64: 128, 256>}, {pipeline_mode = #tpu.pipeline_mode<synchronous>, transform_indices = @transform_9, window_bounds = array<i64: 1, 16>}, {pipeline_mode = #tpu.pipeline_mode<synchronous>, transform_indices = @transform_10, window_bounds = array<i64: 1, 16>}, {pipeline_mode = #tpu.pipeline_mode<synchronous>, transform_indices = @transform_11, window_bounds = array<i64: 256, 16>}, {pipeline_mode = #tpu.pipeline_mode<synchronous>, transform_indices = @transform_12, window_bounds = array<i64: 256, 512>}, {pipeline_mode = #tpu.pipeline_mode<synchronous>, transform_indices = @transform_13, window_bounds = array<i64: 1, 8>}, {pipeline_mode = #tpu.pipeline_mode<synchronous>, transform_indices = @transform_14, window_bounds = array<i64: 1, 8>}, {pipeline_mode = #tpu.pipeline_mode<synchronous>, transform_indices = @transform_15, window_bounds = array<i64: 512, 8>}, {pipeline_mode = #tpu.pipeline_mode<synchronous>, transform_indices = @transform_16, window_bounds = array<i64: 512, 192>}, {pipeline_mode = #tpu.pipeline_mode<synchronous>, transform_indices = @transform_17, window_bounds = array<i64: 1, 192>}, {pipeline_mode = #tpu.pipeline_mode<synchronous>, transform_indices = @transform_18, window_bounds = array<i64: 8, 256>}]} {
    %0 = tpu.iota {dimensions = array<i32: 0>} : vector<8x1xi32>
    %c2_i32 = arith.constant 2 : i32
    %1 = vector.broadcast %c2_i32 : i32 to vector<8x1xi32>
    %2 = arith.cmpi slt, %0, %1 : vector<8x1xi32>
    %3 = arith.extui %2 : vector<8x1xi1> to vector<8x1xi32>
    %4 = arith.sitofp %3 : vector<8x1xi32> to vector<8x1xf32>
    %c0 = arith.constant 0 : index
    %c0_0 = arith.constant 0 : index
    %c0_1 = arith.constant 0 : index
    %5 = vector.load %arg1[%c0, %c0_0, %c0_1] : memref<8x32x64xf32, #tpu.memory_space<vmem>>, vector<8x32x64xf32>
    %cst = arith.constant dense<0.000000e+00> : vector<8x32xf32>
    %6 = vector.multi_reduction <add>, %5, %cst [2] : vector<8x32x64xf32> to vector<8x32xf32>
    %cst_2 = arith.constant 6.400000e+01 : f32
    %7 = vector.broadcast %cst_2 : f32 to vector<8x32xf32>
    %8 = arith.divf %6, %7 : vector<8x32xf32>
    %c0_3 = arith.constant 0 : index
    %c0_4 = arith.constant 0 : index
    %9 = vector.load %arg3[%c0_3, %c0_4] : memref<32x64xf32, #tpu.memory_space<vmem>>, vector<32x64xf32>
    %cst_5 = arith.constant dense<0.000000e+00> : vector<8x64xf32>
    %10 = tpu.matmul %8, %9, %cst_5 {dimension_numbers = #tpu.dot_dimension_numbers<[1], [0], [0], [1], [0, 0, 1, 1], [], []>} : vector<8x32xf32>, vector<32x64xf32>, vector<8x64xf32> -> vector<8x64xf32>
    %c0_6 = arith.constant 0 : index
    %c0_7 = arith.constant 0 : index
    %11 = vector.load %arg4[%c0_6, %c0_7] : memref<1x64xf32, #tpu.memory_space<vmem>>, vector<1x64xf32>
    %12 = vector.broadcast %11 : vector<1x64xf32> to vector<8x64xf32>
    %13 = arith.addf %10, %12 : vector<8x64xf32>
    %14 = vector.extract_strided_slice %13 {offsets = [0, 0], sizes = [8, 32], strides = [1, 1]} : vector<8x64xf32> to vector<8x32xf32>
    %15 = vector.extract_strided_slice %13 {offsets = [0, 32], sizes = [8, 32], strides = [1, 1]} : vector<8x64xf32> to vector<8x32xf32>
    %c0_8 = arith.constant 0 : index
    %c0_9 = arith.constant 0 : index
    %16 = vector.load %arg2[%c0_8, %c0_9] : memref<8x32xf32, #tpu.memory_space<vmem>>, vector<8x32xf32>
    %cst_10 = arith.constant 5.000000e-01 : f32
    %17 = vector.broadcast %cst_10 : f32 to vector<8x32xf32>
    %18 = arith.mulf %17, %15 : vector<8x32xf32>
    %19 = math.exp %18 : vector<8x32xf32>
    %20 = arith.mulf %16, %19 : vector<8x32xf32>
    %21 = arith.addf %14, %20 : vector<8x32xf32>
    %22 = arith.truncf %21 : vector<8x32xf32> to vector<8x32xbf16>
    %c0_11 = arith.constant 0 : index
    %c0_12 = arith.constant 0 : index
    %23 = vector.load %arg5[%c0_11, %c0_12] : memref<32x128xbf16, #tpu.memory_space<vmem>>, vector<32x128xbf16>
    %cst_13 = arith.constant dense<0.000000e+00> : vector<8x128xf32>
    %24 = tpu.matmul %22, %23, %cst_13 {dimension_numbers = #tpu.dot_dimension_numbers<[1], [0], [0], [1], [0, 0, 1, 1], [], []>} : vector<8x32xbf16>, vector<32x128xbf16>, vector<8x128xf32> -> vector<8x128xf32>
    %c0_14 = arith.constant 0 : index
    %c0_15 = arith.constant 0 : index
    %25 = vector.load %arg6[%c0_14, %c0_15] : memref<1x32xf32, #tpu.memory_space<vmem>>, vector<1x32xf32>
    %c0_16 = arith.constant 0 : index
    %c0_17 = arith.constant 0 : index
    %26 = vector.load %arg7[%c0_16, %c0_17] : memref<1x32xf32, #tpu.memory_space<vmem>>, vector<1x32xf32>
    %c0_18 = arith.constant 0 : index
    %c0_19 = arith.constant 0 : index
    %27 = vector.load %arg8[%c0_18, %c0_19] : memref<128x32xf32, #tpu.memory_space<vmem>>, vector<128x32xf32>
    %28 = vector.broadcast %4 : vector<8x1xf32> to vector<8x128xf32>
    %29 = arith.mulf %24, %28 : vector<8x128xf32>
    %cst_20 = arith.constant dense<0.000000e+00> : vector<128xf32>
    %30 = vector.multi_reduction <add>, %29, %cst_20 [0] : vector<8x128xf32> to vector<128xf32>
    %31 = vector.shape_cast %30 : vector<128xf32> to vector<1x128xf32>
    %32 = arith.mulf %29, %29 : vector<8x128xf32>
    %cst_21 = arith.constant dense<0.000000e+00> : vector<128xf32>
    %33 = vector.multi_reduction <add>, %32, %cst_21 [0] : vector<8x128xf32> to vector<128xf32>
    %34 = vector.shape_cast %33 : vector<128xf32> to vector<1x128xf32>
    %35 = tpu.concatenate %31, %34 in 0 : vector<1x128xf32>, vector<1x128xf32> -> vector<2x128xf32>
    %cst_22 = arith.constant dense<0.000000e+00> : vector<2x32xf32>
    %36 = tpu.matmul %35, %27, %cst_22 {dimension_numbers = #tpu.dot_dimension_numbers<[1], [0], [0], [1], [0, 0, 1, 1], [], []>} : vector<2x128xf32>, vector<128x32xf32>, vector<2x32xf32> -> vector<2x32xf32>
    %cst_23 = arith.constant 1.250000e-01 : f32
    %37 = vector.broadcast %cst_23 : f32 to vector<2x32xf32>
    %38 = arith.mulf %36, %37 : vector<2x32xf32>
    %39 = vector.extract_strided_slice %38 {offsets = [0, 0], sizes = [1, 32], strides = [1, 1]} : vector<2x32xf32> to vector<1x32xf32>
    %40 = vector.extract_strided_slice %38 {offsets = [1, 0], sizes = [1, 32], strides = [1, 1]} : vector<2x32xf32> to vector<1x32xf32>
    %41 = arith.mulf %39, %39 : vector<1x32xf32>
    %42 = arith.subf %40, %41 : vector<1x32xf32>
    %cst_24 = arith.constant 9.99999974E-6 : f32
    %43 = vector.broadcast %cst_24 : f32 to vector<1x32xf32>
    %44 = arith.addf %42, %43 : vector<1x32xf32>
    %45 = math.rsqrt %44 : vector<1x32xf32>
    %46 = arith.mulf %25, %45 : vector<1x32xf32>
    %47 = arith.mulf %39, %46 : vector<1x32xf32>
    %48 = arith.subf %26, %47 : vector<1x32xf32>
    %49 = tpu.concatenate %46, %46, %46, %46 in 1 : vector<1x32xf32>, vector<1x32xf32>, vector<1x32xf32>, vector<1x32xf32> -> vector<1x128xf32>
    %50 = tpu.concatenate %48, %48, %48, %48 in 1 : vector<1x32xf32>, vector<1x32xf32>, vector<1x32xf32>, vector<1x32xf32> -> vector<1x128xf32>
    %51 = vector.broadcast %49 : vector<1x128xf32> to vector<8x128xf32>
    %52 = arith.mulf %29, %51 : vector<8x128xf32>
    %53 = vector.broadcast %50 : vector<1x128xf32> to vector<8x128xf32>
    %54 = arith.addf %52, %53 : vector<8x128xf32>
    %cst_25 = arith.constant 0.000000e+00 : f32
    %55 = vector.broadcast %cst_25 : f32 to vector<8x128xf32>
    %56 = arith.maximumf %54, %55 : vector<8x128xf32>
    %57 = arith.truncf %56 : vector<8x128xf32> to vector<8x128xbf16>
    %c0_26 = arith.constant 0 : index
    %c0_27 = arith.constant 0 : index
    %58 = vector.load %arg9[%c0_26, %c0_27] : memref<128x256xbf16, #tpu.memory_space<vmem>>, vector<128x256xbf16>
    %cst_28 = arith.constant dense<0.000000e+00> : vector<8x256xf32>
    %59 = tpu.matmul %57, %58, %cst_28 {dimension_numbers = #tpu.dot_dimension_numbers<[1], [0], [0], [1], [0, 0, 1, 1], [], []>} : vector<8x128xbf16>, vector<128x256xbf16>, vector<8x256xf32> -> vector<8x256xf32>
    %c0_29 = arith.constant 0 : index
    %c0_30 = arith.constant 0 : index
    %60 = vector.load %arg10[%c0_29, %c0_30] : memref<1x16xf32, #tpu.memory_space<vmem>>, vector<1x16xf32>
    %c0_31 = arith.constant 0 : index
    %c0_32 = arith.constant 0 : index
    %61 = vector.load %arg11[%c0_31, %c0_32] : memref<1x16xf32, #tpu.memory_space<vmem>>, vector<1x16xf32>
    %c0_33 = arith.constant 0 : index
    %c0_34 = arith.constant 0 : index
    %62 = vector.load %arg12[%c0_33, %c0_34] : memref<256x16xf32, #tpu.memory_space<vmem>>, vector<256x16xf32>
    %63 = vector.broadcast %4 : vector<8x1xf32> to vector<8x256xf32>
    %64 = arith.mulf %59, %63 : vector<8x256xf32>
    %cst_35 = arith.constant dense<0.000000e+00> : vector<256xf32>
    %65 = vector.multi_reduction <add>, %64, %cst_35 [0] : vector<8x256xf32> to vector<256xf32>
    %66 = vector.shape_cast %65 : vector<256xf32> to vector<1x256xf32>
    %67 = arith.mulf %64, %64 : vector<8x256xf32>
    %cst_36 = arith.constant dense<0.000000e+00> : vector<256xf32>
    %68 = vector.multi_reduction <add>, %67, %cst_36 [0] : vector<8x256xf32> to vector<256xf32>
    %69 = vector.shape_cast %68 : vector<256xf32> to vector<1x256xf32>
    %70 = tpu.concatenate %66, %69 in 0 : vector<1x256xf32>, vector<1x256xf32> -> vector<2x256xf32>
    %cst_37 = arith.constant dense<0.000000e+00> : vector<2x16xf32>
    %71 = tpu.matmul %70, %62, %cst_37 {dimension_numbers = #tpu.dot_dimension_numbers<[1], [0], [0], [1], [0, 0, 1, 1], [], []>} : vector<2x256xf32>, vector<256x16xf32>, vector<2x16xf32> -> vector<2x16xf32>
    %cst_38 = arith.constant 3.125000e-02 : f32
    %72 = vector.broadcast %cst_38 : f32 to vector<2x16xf32>
    %73 = arith.mulf %71, %72 : vector<2x16xf32>
    %74 = vector.extract_strided_slice %73 {offsets = [0, 0], sizes = [1, 16], strides = [1, 1]} : vector<2x16xf32> to vector<1x16xf32>
    %75 = vector.extract_strided_slice %73 {offsets = [1, 0], sizes = [1, 16], strides = [1, 1]} : vector<2x16xf32> to vector<1x16xf32>
    %76 = arith.mulf %74, %74 : vector<1x16xf32>
    %77 = arith.subf %75, %76 : vector<1x16xf32>
    %cst_39 = arith.constant 9.99999974E-6 : f32
    %78 = vector.broadcast %cst_39 : f32 to vector<1x16xf32>
    %79 = arith.addf %77, %78 : vector<1x16xf32>
    %80 = math.rsqrt %79 : vector<1x16xf32>
    %81 = arith.mulf %60, %80 : vector<1x16xf32>
    %82 = arith.mulf %74, %81 : vector<1x16xf32>
    %83 = arith.subf %61, %82 : vector<1x16xf32>
    %84 = tpu.concatenate %81, %81, %81, %81, %81, %81, %81, %81, %81, %81, %81, %81, %81, %81, %81, %81 in 1 : vector<1x16xf32>, vector<1x16xf32>, vector<1x16xf32>, vector<1x16xf32>, vector<1x16xf32>, vector<1x16xf32>, vector<1x16xf32>, vector<1x16xf32>, vector<1x16xf32>, vector<1x16xf32>, vector<1x16xf32>, vector<1x16xf32>, vector<1x16xf32>, vector<1x16xf32>, vector<1x16xf32>, vector<1x16xf32> -> vector<1x256xf32>
    %85 = tpu.concatenate %83, %83, %83, %83, %83, %83, %83, %83, %83, %83, %83, %83, %83, %83, %83, %83 in 1 : vector<1x16xf32>, vector<1x16xf32>, vector<1x16xf32>, vector<1x16xf32>, vector<1x16xf32>, vector<1x16xf32>, vector<1x16xf32>, vector<1x16xf32>, vector<1x16xf32>, vector<1x16xf32>, vector<1x16xf32>, vector<1x16xf32>, vector<1x16xf32>, vector<1x16xf32>, vector<1x16xf32>, vector<1x16xf32> -> vector<1x256xf32>
    %86 = vector.broadcast %84 : vector<1x256xf32> to vector<8x256xf32>
    %87 = arith.mulf %64, %86 : vector<8x256xf32>
    %88 = vector.broadcast %85 : vector<1x256xf32> to vector<8x256xf32>
    %89 = arith.addf %87, %88 : vector<8x256xf32>
    %cst_40 = arith.constant 0.000000e+00 : f32
    %90 = vector.broadcast %cst_40 : f32 to vector<8x256xf32>
    %91 = arith.maximumf %89, %90 : vector<8x256xf32>
    %92 = arith.truncf %91 : vector<8x256xf32> to vector<8x256xbf16>
    %c0_41 = arith.constant 0 : index
    %c0_42 = arith.constant 0 : index
    %93 = vector.load %arg13[%c0_41, %c0_42] : memref<256x512xbf16, #tpu.memory_space<vmem>>, vector<256x512xbf16>
    %cst_43 = arith.constant dense<0.000000e+00> : vector<8x512xf32>
    %94 = tpu.matmul %92, %93, %cst_43 {dimension_numbers = #tpu.dot_dimension_numbers<[1], [0], [0], [1], [0, 0, 1, 1], [], []>} : vector<8x256xbf16>, vector<256x512xbf16>, vector<8x512xf32> -> vector<8x512xf32>
    %c0_44 = arith.constant 0 : index
    %c0_45 = arith.constant 0 : index
    %95 = vector.load %arg14[%c0_44, %c0_45] : memref<1x8xf32, #tpu.memory_space<vmem>>, vector<1x8xf32>
    %c0_46 = arith.constant 0 : index
    %c0_47 = arith.constant 0 : index
    %96 = vector.load %arg15[%c0_46, %c0_47] : memref<1x8xf32, #tpu.memory_space<vmem>>, vector<1x8xf32>
    %c0_48 = arith.constant 0 : index
    %c0_49 = arith.constant 0 : index
    %97 = vector.load %arg16[%c0_48, %c0_49] : memref<512x8xf32, #tpu.memory_space<vmem>>, vector<512x8xf32>
    %98 = vector.broadcast %4 : vector<8x1xf32> to vector<8x512xf32>
    %99 = arith.mulf %94, %98 : vector<8x512xf32>
    %cst_50 = arith.constant dense<0.000000e+00> : vector<512xf32>
    %100 = vector.multi_reduction <add>, %99, %cst_50 [0] : vector<8x512xf32> to vector<512xf32>
    %101 = vector.shape_cast %100 : vector<512xf32> to vector<1x512xf32>
    %102 = arith.mulf %99, %99 : vector<8x512xf32>
    %cst_51 = arith.constant dense<0.000000e+00> : vector<512xf32>
    %103 = vector.multi_reduction <add>, %102, %cst_51 [0] : vector<8x512xf32> to vector<512xf32>
    %104 = vector.shape_cast %103 : vector<512xf32> to vector<1x512xf32>
    %105 = tpu.concatenate %101, %104 in 0 : vector<1x512xf32>, vector<1x512xf32> -> vector<2x512xf32>
    %cst_52 = arith.constant dense<0.000000e+00> : vector<2x8xf32>
    %106 = tpu.matmul %105, %97, %cst_52 {dimension_numbers = #tpu.dot_dimension_numbers<[1], [0], [0], [1], [0, 0, 1, 1], [], []>} : vector<2x512xf32>, vector<512x8xf32>, vector<2x8xf32> -> vector<2x8xf32>
    %cst_53 = arith.constant 7.812500e-03 : f32
    %107 = vector.broadcast %cst_53 : f32 to vector<2x8xf32>
    %108 = arith.mulf %106, %107 : vector<2x8xf32>
    %109 = vector.extract_strided_slice %108 {offsets = [0, 0], sizes = [1, 8], strides = [1, 1]} : vector<2x8xf32> to vector<1x8xf32>
    %110 = vector.extract_strided_slice %108 {offsets = [1, 0], sizes = [1, 8], strides = [1, 1]} : vector<2x8xf32> to vector<1x8xf32>
    %111 = arith.mulf %109, %109 : vector<1x8xf32>
    %112 = arith.subf %110, %111 : vector<1x8xf32>
    %cst_54 = arith.constant 9.99999974E-6 : f32
    %113 = vector.broadcast %cst_54 : f32 to vector<1x8xf32>
    %114 = arith.addf %112, %113 : vector<1x8xf32>
    %115 = math.rsqrt %114 : vector<1x8xf32>
    %116 = arith.mulf %95, %115 : vector<1x8xf32>
    %117 = arith.mulf %109, %116 : vector<1x8xf32>
    %118 = arith.subf %96, %117 : vector<1x8xf32>
    %119 = tpu.concatenate %116, %116, %116, %116, %116, %116, %116, %116, %116, %116, %116, %116, %116, %116, %116, %116, %116, %116, %116, %116, %116, %116, %116, %116, %116, %116, %116, %116, %116, %116, %116, %116, %116, %116, %116, %116, %116, %116, %116, %116, %116, %116, %116, %116, %116, %116, %116, %116, %116, %116, %116, %116, %116, %116, %116, %116, %116, %116, %116, %116, %116, %116, %116, %116 in 1 : vector<1x8xf32>, vector<1x8xf32>, vector<1x8xf32>, vector<1x8xf32>, vector<1x8xf32>, vector<1x8xf32>, vector<1x8xf32>, vector<1x8xf32>, vector<1x8xf32>, vector<1x8xf32>, vector<1x8xf32>, vector<1x8xf32>, vector<1x8xf32>, vector<1x8xf32>, vector<1x8xf32>, vector<1x8xf32>, vector<1x8xf32>, vector<1x8xf32>, vector<1x8xf32>, vector<1x8xf32>, vector<1x8xf32>, vector<1x8xf32>, vector<1x8xf32>, vector<1x8xf32>, vector<1x8xf32>, vector<1x8xf32>, vector<1x8xf32>, vector<1x8xf32>, vector<1x8xf32>, vector<1x8xf32>, vector<1x8xf32>, vector<1x8xf32>, vector<1x8xf32>, vector<1x8xf32>, vector<1x8xf32>, vector<1x8xf32>, vector<1x8xf32>, vector<1x8xf32>, vector<1x8xf32>, vector<1x8xf32>, vector<1x8xf32>, vector<1x8xf32>, vector<1x8xf32>, vector<1x8xf32>, vector<1x8xf32>, vector<1x8xf32>, vector<1x8xf32>, vector<1x8xf32>, vector<1x8xf32>, vector<1x8xf32>, vector<1x8xf32>, vector<1x8xf32>, vector<1x8xf32>, vector<1x8xf32>, vector<1x8xf32>, vector<1x8xf32>, vector<1x8xf32>, vector<1x8xf32>, vector<1x8xf32>, vector<1x8xf32>, vector<1x8xf32>, vector<1x8xf32>, vector<1x8xf32>, vector<1x8xf32> -> vector<1x512xf32>
    %120 = tpu.concatenate %118, %118, %118, %118, %118, %118, %118, %118, %118, %118, %118, %118, %118, %118, %118, %118, %118, %118, %118, %118, %118, %118, %118, %118, %118, %118, %118, %118, %118, %118, %118, %118, %118, %118, %118, %118, %118, %118, %118, %118, %118, %118, %118, %118, %118, %118, %118, %118, %118, %118, %118, %118, %118, %118, %118, %118, %118, %118, %118, %118, %118, %118, %118, %118 in 1 : vector<1x8xf32>, vector<1x8xf32>, vector<1x8xf32>, vector<1x8xf32>, vector<1x8xf32>, vector<1x8xf32>, vector<1x8xf32>, vector<1x8xf32>, vector<1x8xf32>, vector<1x8xf32>, vector<1x8xf32>, vector<1x8xf32>, vector<1x8xf32>, vector<1x8xf32>, vector<1x8xf32>, vector<1x8xf32>, vector<1x8xf32>, vector<1x8xf32>, vector<1x8xf32>, vector<1x8xf32>, vector<1x8xf32>, vector<1x8xf32>, vector<1x8xf32>, vector<1x8xf32>, vector<1x8xf32>, vector<1x8xf32>, vector<1x8xf32>, vector<1x8xf32>, vector<1x8xf32>, vector<1x8xf32>, vector<1x8xf32>, vector<1x8xf32>, vector<1x8xf32>, vector<1x8xf32>, vector<1x8xf32>, vector<1x8xf32>, vector<1x8xf32>, vector<1x8xf32>, vector<1x8xf32>, vector<1x8xf32>, vector<1x8xf32>, vector<1x8xf32>, vector<1x8xf32>, vector<1x8xf32>, vector<1x8xf32>, vector<1x8xf32>, vector<1x8xf32>, vector<1x8xf32>, vector<1x8xf32>, vector<1x8xf32>, vector<1x8xf32>, vector<1x8xf32>, vector<1x8xf32>, vector<1x8xf32>, vector<1x8xf32>, vector<1x8xf32>, vector<1x8xf32>, vector<1x8xf32>, vector<1x8xf32>, vector<1x8xf32>, vector<1x8xf32>, vector<1x8xf32>, vector<1x8xf32>, vector<1x8xf32> -> vector<1x512xf32>
    %121 = vector.broadcast %119 : vector<1x512xf32> to vector<8x512xf32>
    %122 = arith.mulf %99, %121 : vector<8x512xf32>
    %123 = vector.broadcast %120 : vector<1x512xf32> to vector<8x512xf32>
    %124 = arith.addf %122, %123 : vector<8x512xf32>
    %cst_55 = arith.constant 0.000000e+00 : f32
    %125 = vector.broadcast %cst_55 : f32 to vector<8x512xf32>
    %126 = arith.maximumf %124, %125 : vector<8x512xf32>
    %127 = arith.truncf %126 : vector<8x512xf32> to vector<8x512xbf16>
    %c0_56 = arith.constant 0 : index
    %c0_57 = arith.constant 0 : index
    %128 = vector.load %arg17[%c0_56, %c0_57] : memref<512x192xbf16, #tpu.memory_space<vmem>>, vector<512x192xbf16>
    %cst_58 = arith.constant dense<0.000000e+00> : vector<8x192xf32>
    %129 = tpu.matmul %127, %128, %cst_58 {dimension_numbers = #tpu.dot_dimension_numbers<[1], [0], [0], [1], [0, 0, 1, 1], [], []>} : vector<8x512xbf16>, vector<512x192xbf16>, vector<8x192xf32> -> vector<8x192xf32>
    %c0_59 = arith.constant 0 : index
    %c0_60 = arith.constant 0 : index
    %130 = vector.load %arg18[%c0_59, %c0_60] : memref<1x192xf32, #tpu.memory_space<vmem>>, vector<1x192xf32>
    %131 = vector.broadcast %130 : vector<1x192xf32> to vector<8x192xf32>
    %132 = arith.addf %129, %131 : vector<8x192xf32>
    %133 = tpu.concatenate %132, %14, %15 in 1 : vector<8x192xf32>, vector<8x32xf32>, vector<8x32xf32> -> vector<8x256xf32>
    %c0_61 = arith.constant 0 : index
    %c0_62 = arith.constant 0 : index
    %134 = vector.load %arg19[%c0_61, %c0_62] : memref<8x256xf32, #tpu.memory_space<vmem>>, vector<8x256xf32>
    tpu.vector_store %arg19[%c0_61, %c0_62], %133 {strides = array<i32>} : memref<8x256xf32, #tpu.memory_space<vmem>>, vector<8x256xf32>,
    return
  }
  func.func @transform_0(%arg0: i32) -> (i32, i32, i32) {
    %c0_i32 = arith.constant 0 : i32
    %c0_i32_0 = arith.constant 0 : i32
    %c0_i32_1 = arith.constant 0 : i32
    %c0_i32_2 = arith.constant 0 : i32
    return %c0_i32, %c0_i32_0, %c0_i32_1 : i32, i32, i32
  }
  func.func @transform_1(%arg0: i32) -> (i32, i32) {
    %c0_i32 = arith.constant 0 : i32
    %c0_i32_0 = arith.constant 0 : i32
    %c0_i32_1 = arith.constant 0 : i32
    return %c0_i32, %c0_i32_0 : i32, i32
  }
  func.func @transform_2(%arg0: i32) -> (i32, i32) {
    %c0_i32 = arith.constant 0 : i32
    %c0_i32_0 = arith.constant 0 : i32
    %c0_i32_1 = arith.constant 0 : i32
    return %c0_i32, %c0_i32_0 : i32, i32
  }
  func.func @transform_3(%arg0: i32) -> (i32, i32) {
    %c0_i32 = arith.constant 0 : i32
    %c0_i32_0 = arith.constant 0 : i32
    %c0_i32_1 = arith.constant 0 : i32
    return %c0_i32, %c0_i32_0 : i32, i32
  }
  func.func @transform_4(%arg0: i32) -> (i32, i32) {
    %c0_i32 = arith.constant 0 : i32
    %c0_i32_0 = arith.constant 0 : i32
    %c0_i32_1 = arith.constant 0 : i32
    return %c0_i32, %c0_i32_0 : i32, i32
  }
  func.func @transform_5(%arg0: i32) -> (i32, i32) {
    %c0_i32 = arith.constant 0 : i32
    %c0_i32_0 = arith.constant 0 : i32
    %c0_i32_1 = arith.constant 0 : i32
    return %c0_i32, %c0_i32_0 : i32, i32
  }
  func.func @transform_6(%arg0: i32) -> (i32, i32) {
    %c0_i32 = arith.constant 0 : i32
    %c0_i32_0 = arith.constant 0 : i32
    %c0_i32_1 = arith.constant 0 : i32
    return %c0_i32, %c0_i32_0 : i32, i32
  }
  func.func @transform_7(%arg0: i32) -> (i32, i32) {
    %c0_i32 = arith.constant 0 : i32
    %c0_i32_0 = arith.constant 0 : i32
    %c0_i32_1 = arith.constant 0 : i32
    return %c0_i32, %c0_i32_0 : i32, i32
  }
  func.func @transform_8(%arg0: i32) -> (i32, i32) {
    %c0_i32 = arith.constant 0 : i32
    %c0_i32_0 = arith.constant 0 : i32
    %c0_i32_1 = arith.constant 0 : i32
    return %c0_i32, %c0_i32_0 : i32, i32
  }
  func.func @transform_9(%arg0: i32) -> (i32, i32) {
    %c0_i32 = arith.constant 0 : i32
    %c0_i32_0 = arith.constant 0 : i32
    %c0_i32_1 = arith.constant 0 : i32
    return %c0_i32, %c0_i32_0 : i32, i32
  }
  func.func @transform_10(%arg0: i32) -> (i32, i32) {
    %c0_i32 = arith.constant 0 : i32
    %c0_i32_0 = arith.constant 0 : i32
    %c0_i32_1 = arith.constant 0 : i32
    return %c0_i32, %c0_i32_0 : i32, i32
  }
  func.func @transform_11(%arg0: i32) -> (i32, i32) {
    %c0_i32 = arith.constant 0 : i32
    %c0_i32_0 = arith.constant 0 : i32
    %c0_i32_1 = arith.constant 0 : i32
    return %c0_i32, %c0_i32_0 : i32, i32
  }
  func.func @transform_12(%arg0: i32) -> (i32, i32) {
    %c0_i32 = arith.constant 0 : i32
    %c0_i32_0 = arith.constant 0 : i32
    %c0_i32_1 = arith.constant 0 : i32
    return %c0_i32, %c0_i32_0 : i32, i32
  }
  func.func @transform_13(%arg0: i32) -> (i32, i32) {
    %c0_i32 = arith.constant 0 : i32
    %c0_i32_0 = arith.constant 0 : i32
    %c0_i32_1 = arith.constant 0 : i32
    return %c0_i32, %c0_i32_0 : i32, i32
  }
  func.func @transform_14(%arg0: i32) -> (i32, i32) {
    %c0_i32 = arith.constant 0 : i32
    %c0_i32_0 = arith.constant 0 : i32
    %c0_i32_1 = arith.constant 0 : i32
    return %c0_i32, %c0_i32_0 : i32, i32
  }
  func.func @transform_15(%arg0: i32) -> (i32, i32) {
    %c0_i32 = arith.constant 0 : i32
    %c0_i32_0 = arith.constant 0 : i32
    %c0_i32_1 = arith.constant 0 : i32
    return %c0_i32, %c0_i32_0 : i32, i32
  }
  func.func @transform_16(%arg0: i32) -> (i32, i32) {
    %c0_i32 = arith.constant 0 : i32
    %c0_i32_0 = arith.constant 0 : i32
    %c0_i32_1 = arith.constant 0 : i32
    return %c0_i32, %c0_i32_0 : i32, i32
  }
  func.func @transform_17(%arg0: i32) -> (i32, i32) {
    %c0_i32 = arith.constant 0 : i32
    %c0_i32_0 = arith.constant 0 : i32
    %c0_i32_1 = arith.constant 0 : i32
    return %c0_i32, %c0_i32_0 : i32, i32
  }
  func.func @transform_18(%arg0: i32) -> (i32, i32) {
    %c0_i32 = arith.constant 0 : i32
    %c0_i32_0 = arith.constant 0 : i32
    %c0_i32_1 = arith.constant 0 : i32
    return %c0_i32, %c0_i32_0 : i32, i32
  }
}

</mosaic_0001>

<bundles_post_ra>
// kernel: tpu_custom_call.1
= control target key start
LH: loop header
LB: loop body
LE: loop exit
PB: predicated region body
PF: predicated region fallthrough
CT: control target
= control target key end

     0   :  { %s4583_s0 = inlined_call_operand.vmem [shape: f32[8,32,64], index: 0, kind: input, shape index: {}]   ;;  %s4584_s1 = inlined_call_operand.vmem [shape: f32[8,32], index: 1, kind: input, shape index: {}]   ;;  %s4585_s2 = inlined_call_operand.vmem [shape: f32[32,64], index: 2, kind: input, shape index: {}]   ;;  %s4586_s3 = inlined_call_operand.vmem [shape: f32[1,64], index: 3, kind: input, shape index: {}]   ;;  %s4587_s4 = inlined_call_operand.vmem [shape: bf16[32,128], index: 4, kind: input, shape index: {}]   ;;  %s4588_s5 = inlined_call_operand.vmem [shape: f32[1,32], index: 5, kind: input, shape index: {}]   ;;  %s4589_s6 = inlined_call_operand.vmem [shape: f32[1,32], index: 6, kind: input, shape index: {}]   ;;  %s4590_s7 = inlined_call_operand.vmem [shape: f32[128,32], index: 7, kind: input, shape index: {}]   ;;  %s4591_s8 = inlined_call_operand.vmem [shape: bf16[128,256], index: 8, kind: input, shape index: {}]   ;;  %s4592_s9 = inlined_call_operand.vmem [shape: f32[1,16], index: 9, kind: input, shape index: {}]   ;;  %s4593_s10 = inlined_call_operand.vmem [shape: f32[1,16], index: 10, kind: input, shape index: {}]   ;;  %s4594_s11 = inlined_call_operand.vmem [shape: f32[256,16], index: 11, kind: input, shape index: {}]   ;;  %s4595_s12 = inlined_call_operand.vmem [shape: bf16[256,512], index: 12, kind: input, shape index: {}]   ;;  %s4596_s13 = inlined_call_operand.vmem [shape: f32[1,8], index: 13, kind: input, shape index: {}]   ;;  %s4597_s14 = inlined_call_operand.vmem [shape: f32[1,8], index: 14, kind: input, shape index: {}]   ;;  %s4598_s15 = inlined_call_operand.vmem [shape: f32[512,8], index: 15, kind: input, shape index: {}]   ;;  %s4599_s16 = inlined_call_operand.vmem [shape: bf16[512,192], index: 16, kind: input, shape index: {}]   ;;  %s4600_s17 = inlined_call_operand.vmem [shape: f32[1,192], index: 17, kind: input, shape index: {}]   ;;  %s4601_s18 = inlined_call_operand.hbm [shape: f32[8,256], index: 18, kind: output, shape index: {}]  }
   0x1   :  { %4604 = sst [smem:[#allocation5_spill]] %s4583_s0 }
   0x2   :  { %4605 = sst [smem:[#allocation6_spill]] %s4584_s1 }
   0x3   :  { %4606 = sst [smem:[#allocation7_spill]] %s4585_s2 }
   0x4   :  { %s4607_s29 = sld [smem:[#allocation5_spill]]  ;;  %vm98_vm0 = vcmask 523264  }
   0xa   :  { %v70_v0 = vld [vmem:[%s4607_s29 + $0x20] sm:$0xff]  ;;  %v71_v2 = vld [vmem:[%s4607_s29 + $0x28] sm:$0xff]  ;;  %v72_v8 = vld [vmem:[%s4607_s29 + $0x30] sm:$0xff] }
   0xb   :  { %v66_v1 = vld [vmem:[%s4607_s29] sm:$0xff]  ;;  %v111_v3 = vsel %vm98_vm0, %v70_v0, 0.0  ;;  %v67_v5 = vld [vmem:[%s4607_s29 + $0x8] sm:$0xff]  ;;  %v114_v6 = vsel %vm98_vm0, %v71_v2, 0.0  ;;  %v68_v9 = vld [vmem:[%s4607_s29 + $0x10] sm:$0xff]  ;;  %v117_v10 = vsel %vm98_vm0, %v72_v8, 0.0 }
   0xc   :  { %v99_v4 = vsel %vm98_vm0, %v66_v1, 0.0  ;;  %112 = vadd.xlane.f32.xlu1 %v111_v3  ;;  %v102_v7 = vsel %vm98_vm0, %v67_v5, 0.0  ;;  %v105_v11 = vsel %vm98_vm0, %v68_v9, 0.0  ;;  %v75_v12 = vld [vmem:[%s4607_s29 + $0x48] sm:$0xff]  ;;  %v74_v13 = vld [vmem:[%s4607_s29 + $0x40] sm:$0xff]  ;;  %v73_v14 = vld [vmem:[%s4607_s29 + $0x38] sm:$0xff] }
   0xd   :  { %100 = vadd.xlane.f32.xlu0 %v99_v4  ;;  %v126_v15 = vsel %vm98_vm0, %v75_v12, 0.0  ;;  %v123_v16 = vsel %vm98_vm0, %v74_v13, 0.0  ;;  %v69_v17 = vld [vmem:[%s4607_s29 + $0x18] sm:$0xff]  ;;  %v78_v18 = vld [vmem:[%s4607_s29 + $0x60] sm:$0xff]  ;;  %v76_v19 = vld [vmem:[%s4607_s29 + $0x50] sm:$0xff]  ;;  %v120_v20 = vsel %vm98_vm0, %v73_v14, 0.0 }
   0xe   :  { %v108_v21 = vsel %vm98_vm0, %v69_v17, 0.0  ;;  %v77_v22 = vld [vmem:[%s4607_s29 + $0x58] sm:$0xff]  ;;  %v79_v23 = vld [vmem:[%s4607_s29 + $0x68] sm:$0xff]  ;;  %v135_v24 = vsel %vm98_vm0, %v78_v18, 0.0  ;;  %v129_v25 = vsel %vm98_vm0, %v76_v19, 0.0  ;;  %v82_v26 = vld [vmem:[%s4607_s29 + $0x80] sm:$0xff] }
   0xf   :  { %v80_v27 = vld [vmem:[%s4607_s29 + $0x70] sm:$0xff]  ;;  %v132_v28 = vsel %vm98_vm0, %v77_v22, 0.0  ;;  %v138_v29 = vsel %vm98_vm0, %v79_v23, 0.0  ;;  %v81_v30 = vld [vmem:[%s4607_s29 + $0x78] sm:$0xff]  ;;  %v83_v31 = vld [vmem:[%s4607_s29 + $0x88] sm:$0xff]  ;;  %v147_v32 = vsel %vm98_vm0, %v82_v26, 0.0 }
  0x10   :  { %115 = vadd.xlane.f32.xlu1 %v114_v6  ;;  %v141_v33 = vsel %vm98_vm0, %v80_v27, 0.0  ;;  %v86_v34 = vld [vmem:[%s4607_s29 + $0xa0] sm:$0xff]  ;;  %v84_v35 = vld [vmem:[%s4607_s29 + $0x90] sm:$0xff]  ;;  %v144_v36 = vsel %vm98_vm0, %v81_v30, 0.0  ;;  %v150_v37 = vsel %vm98_vm0, %v83_v31, 0.0  ;;  %v85_v38 = vld [vmem:[%s4607_s29 + $0x98] sm:$0xff] }
  0x11   :  { %103 = vadd.xlane.f32.xlu0 %v102_v7  ;;  %v87_v39 = vld [vmem:[%s4607_s29 + $0xa8] sm:$0xff]  ;;  %v159_v40 = vsel %vm98_vm0, %v86_v34, 0.0  ;;  %v153_v41 = vsel %vm98_vm0, %v84_v35, 0.0  ;;  %v90_v42 = vld [vmem:[%s4607_s29 + $0xc0] sm:$0xff]  ;;  %v88_v43 = vld [vmem:[%s4607_s29 + $0xb0] sm:$0xff]  ;;  %v156_v44 = vsel %vm98_vm0, %v85_v38, 0.0 }
  0x12   :  { %v162_v45 = vsel %vm98_vm0, %v87_v39, 0.0  ;;  %v89_v46 = vld [vmem:[%s4607_s29 + $0xb8] sm:$0xff]  ;;  %v91_v47 = vld [vmem:[%s4607_s29 + $0xc8] sm:$0xff]  ;;  %v171_v48 = vsel %vm98_vm0, %v90_v42, 0.0  ;;  %v165_v49 = vsel %vm98_vm0, %v88_v43, 0.0  ;;  %v94_v50 = vld [vmem:[%s4607_s29 + $0xe0] sm:$0xff] }
  0x13   :  { %v92_v51 = vld [vmem:[%s4607_s29 + $0xd0] sm:$0xff]  ;;  %v168_v52 = vsel %vm98_vm0, %v89_v46, 0.0  ;;  %v174_v53 = vsel %vm98_vm0, %v91_v47, 0.0  ;;  %v93_v54 = vld [vmem:[%s4607_s29 + $0xd8] sm:$0xff]  ;;  %v95_v55 = vld [vmem:[%s4607_s29 + $0xe8] sm:$0xff]  ;;  %v183_v56 = vsel %vm98_vm0, %v94_v50, 0.0 }
  0x14   :  { %118 = vadd.xlane.f32.xlu1 %v117_v10  ;;  %v177_v57 = vsel %vm98_vm0, %v92_v51, 0.0  ;;  %v96_v58 = vld [vmem:[%s4607_s29 + $0xf0] sm:$0xff]  ;;  %v97_v59 = vld [vmem:[%s4607_s29 + $0xf8] sm:$0xff]  ;;  %v180_v60 = vsel %vm98_vm0, %v93_v54, 0.0  ;;  %v186_v61 = vsel %vm98_vm0, %v95_v55, 0.0 }
  0x15   :  { %106 = vadd.xlane.f32.xlu0 %v105_v11  ;;  %v189_v62 = vsel %vm98_vm0, %v96_v58, 0.0  ;;  %v192_v63 = vsel %vm98_vm0, %v97_v59, 0.0 }
  0x18   :  { %127 = vadd.xlane.f32.xlu1 %v126_v15 }
  0x19   :  { %124 = vadd.xlane.f32.xlu0 %v123_v16 }
  0x1c   :  { %121 = vadd.xlane.f32.xlu1 %v120_v20 }
  0x1d   :  { %109 = vadd.xlane.f32.xlu0 %v108_v21 }
  0x20   :  { %136 = vadd.xlane.f32.xlu1 %v135_v24 }
  0x21   :  { %130 = vadd.xlane.f32.xlu0 %v129_v25 }
  0x24   :  { %133 = vadd.xlane.f32.xlu1 %v132_v28 }
  0x25   :  { %139 = vadd.xlane.f32.xlu0 %v138_v29 }
  0x28   :  { %148 = vadd.xlane.f32.xlu1 %v147_v32 }
  0x29   :  { %142 = vadd.xlane.f32.xlu0 %v141_v33 }
  0x2c   :  { %145 = vadd.xlane.f32.xlu1 %v144_v36 }
  0x2d   :  { %151 = vadd.xlane.f32.xlu0 %v150_v37 }
  0x30   :  { %160 = vadd.xlane.f32.xlu1 %v159_v40 }
  0x31   :  { %154 = vadd.xlane.f32.xlu0 %v153_v41 }
  0x34   :  { %157 = vadd.xlane.f32.xlu1 %v156_v44 }
  0x35   :  { %163 = vadd.xlane.f32.xlu0 %v162_v45 }
  0x38   :  { %172 = vadd.xlane.f32.xlu1 %v171_v48 }
  0x39   :  { %166 = vadd.xlane.f32.xlu0 %v165_v49 }
  0x3c   :  { %169 = vadd.xlane.f32.xlu1 %v168_v52 }
  0x3d   :  { %175 = vadd.xlane.f32.xlu0 %v174_v53 }
  0x40   :  { %184 = vadd.xlane.f32.xlu1 %v183_v56 }
  0x41   :  { %178 = vadd.xlane.f32.xlu0 %v177_v57 }
  0x44   :  { %181 = vadd.xlane.f32.xlu1 %v180_v60 }
  0x45   :  { %187 = vadd.xlane.f32.xlu0 %v186_v61 }
  0x46   :  { %23 = vsyncpa [#allocation3], 0  ;;  %v3176_v0 = vmov 0.0   ;;  %s4608_s23 = sld [smem:[#allocation7_spill]]  ;;  %vm3177_vm1 = vmmov 0   ;;  %v61_v19 = vlaneseq  ;;  %vm282_vm2 = vcmask 130112  }
  0x47   :  { %2854 = vmatprep.subr.mxu1 %v3176_v0  ;;  %2873 = vmatprep.subr.mxu0 %v3176_v0  ;;  %vm289_vm3 = vcmask 195712   ;;  %vm296_vm4 = vcmask 261312   ;;  %vm431_vm5 = vcmask 1041409   ;;  %vm433_vm6 = vcmask 1042434   ;;  %s3178_s28 = smov 96   ;;  %s4609_s22 = sld [smem:[#allocation6_spill]] }
  0x48   :  { %193 = vadd.xlane.f32.xlu1 %v192_v63  ;;  %2862 = vmatprep.mubr.msk.f32.mxu1 %vm3177_vm1, %v3176_v0  ;;  %v272_v22 = vand.u32 127, %v61_v19  ;;  %v3443_v23 = vshrl.u32 %v61_v19, 7  ;;  %vm435_vm7 = vcmask 1043459   ;;  %vm437_vm8 = vcmask 1044484   ;;  %s3180_s20 = smov 32   ;;  %s3184_s24 = smov 48  }
  0x49   :  { %190 = vadd.xlane.f32.xlu0 %v189_v62  ;;  %2905 = vmatprep.mubr.msk.f32.mxu0 %vm3177_vm1, %v3176_v0  ;;  %vm439_vm9 = vcmask 1045509   ;;  %vm441_vm10 = vcmask 1046534   ;;  %vm443_vm11 = vcmask 1047559   ;;  %vm445_vm12 = vcmask 261120   ;;  %s3186_s19 = smov 112   ;;  %s3187_s27 = smov 8  }
  0x4a   :  { %v277_v26 = vadd.s32 4294967288, %v272_v22  ;;  %v284_v27 = vadd.s32 4294967280, %v272_v22  ;;  %v291_v28 = vadd.s32 4294967272, %v272_v22  ;;  %v3446_v29 = vsub.s32 %v272_v22, %v3443_v23  ;;  %s3194_s2 = smov 120  }
  0x4b   :  { %vm63_vm13 = vcmp.lt.s32.totalorder %v3443_v23, 2  ;;  %vm620_vm14 = vcmask 1040384   ;;  %vm736_vm15 = vcmask 785408  }
  0x4c   :  { %v231_v1 = vld [vmem:[%s4608_s23 + $0x18] sm:$0xff]  ;;  %v230_v2 = vld [vmem:[%s4608_s23 + $0x10] sm:$0xff]  ;;  %v229_v3 = vld [vmem:[%s4608_s23 + $0x8] sm:$0xff]  ;;  %v3451_v34 = vsub.s32 %v277_v26, %v3443_v23  ;;  %v3454_v37 = vsub.s32 %v284_v27, %v3443_v23  ;;  %v3457_v41 = vsub.s32 %v291_v28, %v3443_v23 }
  0x4d   :  { %2855 = vmatpush3.msra.mxu1 %v231_v1  ;;  %v228_v4 = vld [vmem:[%s4608_s23] sm:$0xff]  ;;  %s3181_s23 = smov 64  }
  0x4e   :  { %2856 = vmatprep.subr.mxu1 %v3176_v0 }
  0x4f   :  { %2857 = vmatpush3.msra.mxu1 %v230_v2 }
  0x50   :  { %2858 = vmatprep.subr.mxu1 %v3176_v0 }
  0x51   :  { %2859 = vmatpush3.msra.mxu1 %v229_v3 }
  0x52   :  { %2860 = vmatprep.subr.mxu1 %v3176_v0 }
  0x53   :  { %2861 = vmatpush3.msra.mxu1 %v228_v4 }
  0x54   :  { %2865 = vmatprep.subr.bf16.mxu1 %v3176_v0 }
  0x95   :  { %v113_v5 = vpop.xlane.xlu1 %112 }
  0x96   :  { %v101_v6 = vpop.xlane.xlu0 %100  ;;  %v200_v32 = vmul.f32 0.015625, %v113_v5 }
  0x97   :  { %v196_v39 = vmul.f32 0.015625, %v101_v6 }
  0x98   :  { %v301_v45 = vrot.slane %v200_v32, %v3446_v29 }
  0x99   :  { %v116_v7 = vpop.xlane.xlu1 %115  ;;  %v276_v52 = vrot.slane %v196_v39, %v3446_v29 }
  0x9a   :  { %v104_v8 = vpop.xlane.xlu0 %103  ;;  %v201_v33 = vmul.f32 0.015625, %v116_v7 }
  0x9b   :  { %v197_v35 = vmul.f32 0.015625, %v104_v8 }
  0x9c   :  { %v305_v46 = vrot.slane %v201_v33, %v3451_v34 }
  0x9d   :  { %v119_v9 = vpop.xlane.xlu1 %118  ;;  %v281_v47 = vrot.slane %v197_v35, %v3451_v34 }
  0x9e   :  { %v107_v10 = vpop.xlane.xlu0 %106  ;;  %v202_v36 = vmul.f32 0.015625, %v119_v9  ;;  %v306_v58 = vsel %vm282_vm2, %v305_v46, %v301_v45 }
  0x9f   :  { %v198_v38 = vmul.f32 0.015625, %v107_v10  ;;  %v283_v59 = vsel %vm282_vm2, %v281_v47, %v276_v52 }
  0xa0   :  { %v310_v48 = vrot.slane %v202_v36, %v3454_v37 }
  0xa1   :  { %v128_v11 = vpop.xlane.xlu1 %127  ;;  %v288_v49 = vrot.slane %v198_v38, %v3454_v37 }
  0xa2   :  { %v125_v12 = vpop.xlane.xlu0 %124  ;;  %v205_v50 = vmul.f32 0.015625, %v128_v11  ;;  %v311_v61 = vsel %vm289_vm3, %v310_v48, %v306_v58 }
  0xa3   :  { %v204_v51 = vmul.f32 0.015625, %v125_v12  ;;  %v290_v62 = vsel %vm289_vm3, %v288_v49, %v283_v59 }
  0xa4   :  { %v324_v63 = vrot.slane %v205_v50, %v3451_v34 }
  0xa5   :  { %v122_v13 = vpop.xlane.xlu1 %121  ;;  %v320_v1 = vrot.slane %v204_v51, %v3446_v29 }
  0xa6   :  { %v110_v14 = vpop.xlane.xlu0 %109  ;;  %v203_v40 = vmul.f32 0.015625, %v122_v13 }
  0xa7   :  { %v199_v42 = vmul.f32 0.015625, %v110_v14  ;;  %v325_v11 = vsel %vm282_vm2, %v324_v63, %v320_v1 }
  0xa8   :  { %v315_v53 = vrot.slane %v203_v40, %v3457_v41 }
  0xa9   :  { %v137_v15 = vpop.xlane.xlu1 %136  ;;  %v295_v54 = vrot.slane %v199_v42, %v3457_v41 }
  0xaa   :  { %v131_v16 = vpop.xlane.xlu0 %130  ;;  %v316_v2 = vsel %vm296_vm4, %v315_v53, %v311_v61  ;;  %v208_v9 = vmul.f32 0.015625, %v137_v15 }
  0xab   :  { %v206_v55 = vmul.f32 0.015625, %v131_v16  ;;  %v297_v3 = vsel %vm296_vm4, %v295_v54, %v290_v62 }
  0xac   :  { %v432_v12 = vsel %vm431_vm5, %v316_v2, %v297_v3  ;;  %v339_v28 = vrot.slane %v208_v9, %v3446_v29  ;;  %vm1962_vm5 = vcmask 64512  }
  0xad   :  { %v134_v17 = vpop.xlane.xlu1 %133  ;;  %v329_v4 = vrot.slane %v206_v55, %v3454_v37 }
  0xae   :  { %v140_v18 = vpop.xlane.xlu0 %139  ;;  %v207_v60 = vmul.f32 0.015625, %v134_v17 }
  0xaf   :  { %v209_v5 = vmul.f32 0.015625, %v140_v18  ;;  %v330_v14 = vsel %vm289_vm3, %v329_v4, %v325_v11 }
  0xb0   :  { %v334_v10 = vrot.slane %v207_v60, %v3457_v41 }
  0xb1   :  { %v149_v20 = vpop.xlane.xlu1 %148  ;;  %v343_v16 = vrot.slane %v209_v5, %v3451_v34 }
  0xb2   :  { %v3441_v21 = vpop.xlane.xlu0 %142  ;;  %v212_v13 = vmul.f32 0.015625, %v149_v20  ;;  %v335_v20 = vsel %vm296_vm4, %v334_v10, %v330_v14 }
  0xb3   :  { %v210_v17 = vmul.f32 0.015625, %v3441_v21 }
  0xb4   :  { %v358_v35 = vrot.slane %v212_v13, %v3446_v29 }
  0xb5   :  { %v146_v24 = vpop.xlane.xlu1 %145  ;;  %v348_v38 = vrot.slane %v210_v17, %v3454_v37 }
  0xb6   :  { %v152_v25 = vpop.xlane.xlu0 %151  ;;  %v211_v18 = vmul.f32 0.015625, %v146_v24  ;;  %v344_v24 = vsel %vm282_vm2, %v343_v16, %v339_v28  ;;  %v2929_v28 = vld [vmem:[%s4587_s4] sm:$0xff]  }
  0xb7   :  { %v213_v6 = vmul.f32 0.015625, %v152_v25  ;;  %v349_v55 = vsel %vm289_vm3, %v348_v38, %v344_v24  ;;  %v599_v24 = vld [vmem:[%s4590_s7 + $0x48] sm:$0xff]  ;;  %v518_v38 = vld [vmem:[%s4609_s22] sm:$0xff]  ;;  %s3192_s22 = smov 88  }
  0xb8   :  { %v353_v42 = vrot.slane %v211_v18, %v3457_v41 }
  0xb9   :  { %v3448_v30 = vpop.xlane.xlu1 %160  ;;  %v362_v22 = vrot.slane %v213_v6, %v3451_v34  ;;  %v434_v6 = vsel %vm433_vm6, %v335_v20, %v432_v12  ;;  %v605_v20 = vld [vmem:[%s4590_s7 + $0x78] sm:$0xff]  ;;  %vm1965_vm6 = vcmask 195584  }
  0xba   :  { %v155_v31 = vpop.xlane.xlu0 %154  ;;  %v216_v21 = vmul.f32 0.015625, %v3448_v30  ;;  %v354_v59 = vsel %vm296_vm4, %v353_v42, %v349_v55  ;;  %2874 = vmatpush3.msra.mxu0 %v605_v20 }
  0xbb   :  { %v214_v19 = vmul.f32 0.015625, %v155_v31  ;;  %v436_v10 = vsel %vm435_vm7, %v354_v59, %v434_v6  ;;  %2875 = vmatprep.subr.mxu0 %v3176_v0  ;;  %vm1968_vm7 = vcmask 326656  }
  0xbc   :  { %v377_v51 = vrot.slane %v216_v21, %v3446_v29 }
  0xbd   :  { %v158_v43 = vpop.xlane.xlu1 %157  ;;  %v367_v39 = vrot.slane %v214_v19, %v3454_v37 }
  0xbe   :  { %v164_v44 = vpop.xlane.xlu0 %163  ;;  %v215_v15 = vmul.f32 0.015625, %v158_v43  ;;  %v363_v43 = vsel %vm282_vm2, %v362_v22, %v358_v35  ;;  %v602_v35 = vld [vmem:[%s4590_s7 + $0x60] sm:$0xff] }
  0xbf   :  { %v217_v25 = vmul.f32 0.015625, %v164_v44 }
  0xc0   :  { %v372_v44 = vrot.slane %v215_v15, %v3457_v41 }
  0xc1   :  { %v173_v56 = vpop.xlane.xlu1 %172  ;;  %v381_v45 = vrot.slane %v217_v25, %v3451_v34 }
  0xc2   :  { %v167_v57 = vpop.xlane.xlu0 %166  ;;  %v220_v40 = vmul.f32 0.015625, %v173_v56  ;;  %v368_v56 = vsel %vm289_vm3, %v367_v39, %v363_v43 }
  0xc3   :  { %v218_v32 = vmul.f32 0.015625, %v167_v57  ;;  %v373_v60 = vsel %vm296_vm4, %v372_v44, %v368_v56  ;;  %v382_v61 = vsel %vm282_vm2, %v381_v45, %v377_v51  ;;  %v598_v44 = vld [vmem:[%s4590_s7 + $0x40] sm:$0xff]  ;;  %v597_v45 = vld [vmem:[%s4590_s7 + $0x38] sm:$0xff] }
  0xc4   :  { %v396_v57 = vrot.slane %v220_v40, %v3446_v29  ;;  %v438_v14 = vsel %vm437_vm8, %v373_v60, %v436_v10  ;;  %v590_v51 = vld [vmem:[%s4590_s7] sm:$0xff]  ;;  %vm1971_vm8 = vcmask 457728  }
  0xc5   :  { %v170_v7 = vpop.xlane.xlu1 %169  ;;  %v386_v47 = vrot.slane %v218_v32, %v3454_v37  ;;  %v604_v32 = vld [vmem:[%s4590_s7 + $0x70] sm:$0xff]  ;;  %v2935_v10 = vld [vmem:[%s4591_s8 + $0x64] ss:$8 sps:$4 sm:$0xff]  }
  0xc6   :  { %v176_v8 = vpop.xlane.xlu0 %175  ;;  %v219_v31 = vmul.f32 0.015625, %v170_v7  ;;  %2876 = vmatpush3.msra.mxu0 %v604_v32  ;;  %v2942_v32 = vld [vmem:[%s4591_s8 + $0x30] ss:$8 sps:$4 sm:$0xff]  }
  0xc7   :  { %v221_v33 = vmul.f32 0.015625, %v176_v8  ;;  %v387_v2 = vsel %vm289_vm3, %v386_v47, %v382_v61  ;;  %2877 = vmatprep.subr.mxu0 %v3176_v0  ;;  %v594_v47 = vld [vmem:[%s4590_s7 + $0x20] sm:$0xff] }
  0xc8   :  { %v391_v52 = vrot.slane %v219_v31, %v3457_v41  ;;  %v601_v31 = vld [vmem:[%s4590_s7 + $0x58] sm:$0xff] }
  0xc9   :  { %v185_v26 = vpop.xlane.xlu1 %184  ;;  %v400_v48 = vrot.slane %v221_v33, %v3451_v34  ;;  %v603_v33 = vld [vmem:[%s4590_s7 + $0x68] sm:$0xff] }
  0xca   :  { %v179_v27 = vpop.xlane.xlu0 %178  ;;  %v224_v53 = vmul.f32 0.015625, %v185_v26  ;;  %v392_v7 = vsel %vm296_vm4, %v391_v52, %v387_v2  ;;  %2878 = vmatpush3.msra.mxu0 %v603_v33  ;;  %v3610_v52 = vsel %vm63_vm13, 1.0, %v3176_v0  ;;  %v2944_v33 = vld [vmem:[%s4591_s8 + $0x34] ss:$8 sps:$4 sm:$0xff]   ;;  %vm1983_vm13 = vcmask 982016  }
  0xcb   :  { %v222_v36 = vmul.f32 0.015625, %v179_v27  ;;  %v401_v3 = vsel %vm282_vm2, %v400_v48, %v396_v57  ;;  %v440_v17 = vsel %vm439_vm9, %v392_v7, %v438_v14  ;;  %2879 = vmatprep.subr.mxu0 %v3176_v0  ;;  %v593_v48 = vld [vmem:[%s4590_s7 + $0x18] sm:$0xff]  ;;  %vm1974_vm9 = vcmask 588800  }
  0xcc   :  { %v415_v8 = vrot.slane %v224_v53, %v3446_v29  ;;  %2880 = vmatpush3.msra.mxu0 %v602_v35 }
  0xcd   :  { %v182_v30 = vpop.xlane.xlu1 %181  ;;  %v405_v54 = vrot.slane %v222_v36, %v3454_v37  ;;  %2881 = vmatprep.subr.mxu0 %v3176_v0  ;;  %v600_v36 = vld [vmem:[%s4590_s7 + $0x50] sm:$0xff] }
  0xce   :  { %v188_v46 = vpop.xlane.xlu0 %187  ;;  %v223_v49 = vmul.f32 0.015625, %v182_v30  ;;  %2882 = vmatpush3.msra.mxu0 %v601_v31  ;;  %v596_v30 = vld [vmem:[%s4590_s7 + $0x30] sm:$0xff] }
  0xcf   :  { %v225_v50 = vmul.f32 0.015625, %v188_v46  ;;  %v406_v9 = vsel %vm289_vm3, %v405_v54, %v401_v3  ;;  %2883 = vmatprep.subr.mxu0 %v3176_v0  ;;  %v595_v46 = vld [vmem:[%s4590_s7 + $0x28] sm:$0xff] }
  0xd0   :  { %v410_v58 = vrot.slane %v223_v49, %v3457_v41  ;;  %2884 = vmatpush3.msra.mxu0 %v600_v36  ;;  %v592_v49 = vld [vmem:[%s4590_s7 + $0x10] sm:$0xff]  ;;  %v3659_v36 = vsub.s32 0, %v3443_v23 }
  0xd1   :  { %v419_v62 = vrot.slane %v225_v50, %v3451_v34  ;;  %v194_v1 = vpop.xlane.xlu1 %193  ;;  %2885 = vmatprep.subr.mxu0 %v3176_v0  ;;  %v591_v50 = vld [vmem:[%s4590_s7 + $0x8] sm:$0xff] }
  0xd2   :  { %v191_v63 = vpop.xlane.xlu0 %190  ;;  %v227_v5 = vmul.f32 0.015625, %v194_v1  ;;  %v411_v34 = vsel %vm296_vm4, %v410_v58, %v406_v9  ;;  %2886 = vmatpush3.msra.mxu0 %v599_v24  ;;  %v2932_v9 = vld [vmem:[%s4591_s8 + $0x74] ss:$8 sps:$4 sm:$0xff]   ;;  %v2947_v24 = vld [vmem:[%s4591_s8 + $0x24] ss:$8 sps:$4 sm:$0xff]  }
  0xd3   :  { %v226_v4 = vmul.f32 0.015625, %v191_v63  ;;  %v420_v16 = vsel %vm282_vm2, %v419_v62, %v415_v8  ;;  %v442_v19 = vsel %vm441_vm10, %v411_v34, %v440_v17  ;;  %2887 = vmatprep.subr.mxu0 %v3176_v0  ;;  %v2930_v8 = vld [vmem:[%s4591_s8 + $0x70] ss:$8 sps:$4 sm:$0xff]   ;;  %v2933_v34 = vld [vmem:[%s4591_s8 + $0x60] ss:$8 sps:$4 sm:$0xff]   ;;  %vm1095_vm2 = vcmask 392192  }
  0xd4   :  { %v429_v13 = vrot.slane %v227_v5, %v3457_v41  ;;  %v2575_v41 = vld [vmem:[%s4586_s3] ss:$0 sm:$0xff]  ;;  %2888 = vmatpush3.msra.mxu0 %v598_v44  ;;  %v2950_v44 = vld [vmem:[%s4591_s8 + $0x14] ss:$8 sps:$4 sm:$0xff]   ;;  %vm1977_vm10 = vcmask 719872  }
  0xd5   :  { %v424_v11 = vrot.slane %v226_v4, %v3454_v37  ;;  %v2928_v37 = vld [vmem:[%s4587_s4 + $0x8] sm:$0xff]   ;;  %2889 = vmatprep.subr.mxu0 %v3176_v0 }
  0xd6   :  { %2890 = vmatpush3.msra.mxu0 %v597_v45 }
  0xd7   :  { %v425_v12 = vsel %vm289_vm3, %v424_v11, %v420_v16  ;;  %2891 = vmatprep.subr.mxu0 %v3176_v0  ;;  %v2938_v11 = vld [vmem:[%s4591_s8 + $0x54] ss:$8 sps:$4 sm:$0xff]   ;;  %vm1098_vm3 = vcmask 654336  }
  0xd8   :  { %v430_v29 = vsel %vm296_vm4, %v429_v13, %v425_v12  ;;  %2892 = vmatpush3.msra.mxu0 %v596_v30  ;;  %v2936_v13 = vld [vmem:[%s4591_s8 + $0x50] ss:$8 sps:$4 sm:$0xff]   ;;  %vm1101_vm4 = vcmask 916480  }
  0xd9   :  { %v444_v18 = vsel %vm443_vm11, %v430_v29, %v442_v19  ;;  %2893 = vmatprep.subr.mxu0 %v3176_v0  ;;  %v2948_v30 = vld [vmem:[%s4591_s8 + $0x10] ss:$8 sps:$4 sm:$0xff]   ;;  %vm1980_vm11 = vcmask 850944  }
  0xda   :  { %2863 = vmatmul.mubr.msk.f32.vlgmr.msra.gmra.mxu1 %vm445_vm12, %v444_v18  ;;  %2894 = vmatpush3.msra.mxu0 %v595_v46 }
  0xdb   :  { %2869 = vmatprep.mubr.msk.bf16.mxu1 %vm3177_vm1, %v3176_v0  ;;  %2866 = vmatpush3.bf16.msra.mxu1 %v2928_v37  ;;  %v3179_v37 = vmov 1966171168   ;;  %vm1092_vm1 = vcmask 130048  }
  0xdc   :  { %2867 = vmatprep.subr.bf16.mxu1 %v3176_v0  ;;  %2895 = vmatprep.subr.mxu0 %v3176_v0 }
  0xdd   :  { %2896 = vmatpush3.msra.mxu0 %v594_v47  ;;  %v2953_v47 = vld [vmem:[%s4591_s8 + $0x4] ss:$8 sps:$4 sm:$0xff]  }
  0xde   :  { %2897 = vmatprep.subr.mxu0 %v3176_v0 }
  0xdf   :  { %2868 = vmatpush3.bf16.msra.mxu1 %v2929_v28  ;;  %2898 = vmatpush3.msra.mxu0 %v593_v48  ;;  %v2951_v48 = vld [vmem:[%s4591_s8] ss:$8 sps:$4 sm:$0xff]  }
  0xe0   :  { %2899 = vmatprep.subr.mxu0 %v3176_v0  ;;  %863 = vmatprep.subr.bf16.mxu1 %v2932_v9 }
  0xe1   :  { %2900 = vmatpush3.msra.mxu0 %v592_v49  ;;  %v3182_v49 = vmov 0  }
  0xe2   :  { %2901 = vmatprep.subr.mxu0 %v3176_v0 }
  0xe3   :  { %2902 = vmatpush3.msra.mxu0 %v591_v50  ;;  %v937_v50 = vld [vmem:[%s4594_s11 + $0xf8] sm:$0xff] }
  0xe4   :  { %2903 = vmatprep.subr.mxu0 %v3176_v0 }
  0xe5   :  { %2904 = vmatpush3.msra.mxu0 %v590_v51  ;;  %v921_v51 = vld [vmem:[%s4594_s11 + $0x78] sm:$0xff] }
  0xe6   :  { %2749 = vmatprep.subr.mxu0 %v937_v50 }
 0x19a   :  { %v514_v22 = vpop.f32.mrf.mxu1 }
 0x19b   :  { %v3533_v15 = vadd.f32 %v2575_v41, %v514_v22  ;;  %v702_v41 = vunpack.c.l.s4 %v3179_v37  ;;  %v929_v37 = vld [vmem:[%s4594_s11 + $0xb8] sm:$0xff] }
 0x19c   :  { %v2864_v25 = vpop.f32.mrf.mxu1 }
 0x19d   :  { %v519_v26 = vmul.f32 0.5, %v3533_v15  ;;  %v703_v22 = vunpack.c.0.s8 %v702_v41  ;;  %v913_v41 = vld [vmem:[%s4594_s11 + $0x38] sm:$0xff] }
 0x19f   :  { %v520_v27 = vmul.f32 1.442695, %v519_v26  ;;  %v3639_v25 = vsub.s32 %v703_v22, %v3443_v23  ;;  %v2939_v26 = vld [vmem:[%s4591_s8 + $0x40] ss:$8 sps:$4 sm:$0xff]   ;;  %v928_v22 = vld [vmem:[%s4594_s11 + $0xb0] sm:$0xff] }
 0x1a1   :  { %3146 = vpow2.f32 %v520_v27  ;;  %v2941_v27 = vld [vmem:[%s4591_s8 + $0x44] ss:$8 sps:$4 sm:$0xff]  }
 0x1ae   :  { %v3147_v21 = vpop.eup %3146 }
 0x1af   :  { %523 = vrot.lane.b32.xlu0 %v3147_v21, %s3178_s28  ;;  %v588_v21 = vld [vmem:[%s4588_s5] sm:$0x1]  ;;  %s3185_s5 = smov 80  }
 0x221   :  { %v524_v39 = vpop.permute.xlu0 %523 }
 0x222   :  { %v526_v40 = vmul.f32 %v524_v39, %v518_v38  ;;  %v2945_v39 = vld [vmem:[%s4591_s8 + $0x20] ss:$8 sps:$4 sm:$0xff]  }
 0x224   :  { %v527_v42 = vadd.f32 %v526_v40, %v3533_v15  ;;  %v589_v40 = vld [vmem:[%s4589_s6] sm:$0x1] }
 0x226   :  { %v528_v43 = vpack.c.bf16 %v527_v42, %v527_v42 }
 0x228   :  { %2870 = vmatmul.mubr.msk.bf16.vlgmr.msra.gmra.mxu1 %vm445_vm12, %v528_v43 }
 0x229   :  { %864 = vmatpush1.bf16.msra.mxu1 %v2930_v8  ;;  %895 = vmatprep.mubr.bf16.mxu1 %v3182_v49 }
 0x22a   :  { %865 = vmatprep.subr.bf16.mxu1 %v2935_v10 }
 0x22d   :  { %866 = vmatpush1.bf16.msra.mxu1 %v2933_v34 }
 0x22e   :  { %867 = vmatprep.subr.bf16.mxu1 %v2938_v11 }
 0x231   :  { %868 = vmatpush1.bf16.msra.mxu1 %v2936_v13 }
 0x232   :  { %869 = vmatprep.subr.bf16.mxu1 %v2941_v27  ;;  %v927_v27 = vld [vmem:[%s4594_s11 + $0xa8] sm:$0xff] }
 0x235   :  { %870 = vmatpush1.bf16.msra.mxu1 %v2939_v26  ;;  %v912_v26 = vld [vmem:[%s4594_s11 + $0x30] sm:$0xff] }
 0x236   :  { %871 = vmatprep.subr.bf16.mxu1 %v2944_v33  ;;  %v925_v33 = vld [vmem:[%s4594_s11 + $0x98] sm:$0xff] }
 0x239   :  { %872 = vmatpush1.bf16.msra.mxu1 %v2942_v32  ;;  %v910_v32 = vld [vmem:[%s4594_s11 + $0x20] sm:$0xff] }
 0x23a   :  { %873 = vmatprep.subr.bf16.mxu1 %v2947_v24  ;;  %v923_v24 = vld [vmem:[%s4594_s11 + $0x88] sm:$0xff] }
 0x23d   :  { %874 = vmatpush1.bf16.msra.mxu1 %v2945_v39  ;;  %v922_v39 = vld [vmem:[%s4594_s11 + $0x80] sm:$0xff] }
 0x23e   :  { %875 = vmatprep.subr.bf16.mxu1 %v2950_v44 }
 0x241   :  { %876 = vmatpush1.bf16.msra.mxu1 %v2948_v30 }
 0x242   :  { %877 = vmatprep.subr.bf16.mxu1 %v2953_v47 }
 0x245   :  { %878 = vmatpush1.bf16.msra.mxu1 %v2951_v48 }
 0x2e8   :  { %v582_v53 = vpop.f32.mrf.mxu1 }
 0x2e9   :  { %v3613_v54 = vmul.f32 %v3610_v52, %v582_v53  ;;  %v936_v53 = vld [vmem:[%s4594_s11 + $0xf0] sm:$0xff] }
 0x2ea   :  { %v2871_v55 = vpop.f32.mrf.mxu1 }
 0x2eb   :  { %v607_v56 = vrot.slane %v3613_v54, 4  ;;  %v613_v57 = vmul.f32 %v3613_v54, %v3613_v54  ;;  %v920_v55 = vld [vmem:[%s4594_s11 + $0x70] sm:$0xff] }
 0x2ec   :  { %v585_v58 = vpop.f32.mrf.mxu1 }
 0x2ed   :  { %v608_v59 = vadd.f32 %v607_v56, %v3613_v54  ;;  %v614_v60 = vrot.slane %v613_v57, 4  ;;  %v935_v56 = vld [vmem:[%s4594_s11 + $0xe8] sm:$0xff]  ;;  %v934_v58 = vld [vmem:[%s4594_s11 + $0xe0] sm:$0xff] }
 0x2ee   :  { %v2872_v61 = vpop.f32.mrf.mxu1 }
 0x2ef   :  { %v609_v62 = vrot.slane %v608_v59, 2  ;;  %v615_v63 = vadd.f32 %v614_v60, %v613_v57  ;;  %v919_v57 = vld [vmem:[%s4594_s11 + $0x68] sm:$0xff]  ;;  %v933_v60 = vld [vmem:[%s4594_s11 + $0xd8] sm:$0xff] }
 0x2f0   :  { %v917_v61 = vld [vmem:[%s4594_s11 + $0x58] sm:$0xff] }
 0x2f1   :  { %v610_v1 = vadd.f32 %v609_v62, %v608_v59  ;;  %v616_v0 = vrot.slane %v615_v63, 2  ;;  %v918_v59 = vld [vmem:[%s4594_s11 + $0x60] sm:$0xff]  ;;  %v932_v62 = vld [vmem:[%s4594_s11 + $0xd0] sm:$0xff] }
 0x2f3   :  { %v611_v2 = vrot.slane %v610_v1, 1  ;;  %v617_v3 = vadd.f32 %v616_v0, %v615_v63 }
 0x2f5   :  { %v618_v4 = vrot.slane %v617_v3, 1  ;;  %v612_v5 = vadd.f32 %v611_v2, %v610_v1 }
 0x2f7   :  { %v619_v6 = vadd.f32 %v618_v4, %v617_v3 }
 0x2f9   :  { %v621_v7 = vsel %vm620_vm14, %v612_v5, %v619_v6 }
 0x2fa   :  { %2906 = vmatmul.mubr.f32.vlgmr.msra.gmra.mxu0 %v621_v7 }
 0x2fb   :  { %2750 = vmatpush3.msra.mxu0 %v921_v51 }
 0x2fc   :  { %2751 = vmatprep.subr.mxu0 %v936_v53 }
 0x2fd   :  { %2752 = vmatpush3.msra.mxu0 %v920_v55 }
 0x2fe   :  { %2753 = vmatprep.subr.mxu0 %v935_v56 }
 0x2ff   :  { %2754 = vmatpush3.msra.mxu0 %v919_v57 }
 0x300   :  { %2755 = vmatprep.subr.mxu0 %v934_v58 }
 0x301   :  { %2756 = vmatpush3.msra.mxu0 %v918_v59 }
 0x302   :  { %2757 = vmatprep.subr.mxu0 %v933_v60 }
 0x303   :  { %2758 = vmatpush3.msra.mxu0 %v917_v61 }
 0x304   :  { %2759 = vmatprep.subr.mxu0 %v932_v62 }
 0x3ba   :  { %v688_v14 = vpop.f32.mrf.mxu0 }
 0x3bb   :  { %v692_v16 = vmul.f32 0.125, %v688_v14 }
 0x3bc   :  { %v2907_v12 = vpop.f32.mrf.mxu0 }
 0x3bd   :  { %v693_v17 = vmul.f32 %v692_v16, %v692_v16 }
 0x3bf   :  { %v695_v29 = vrot.slane %v693_v17, 7  ;;  %v916_v17 = vld [vmem:[%s4594_s11 + $0x50] sm:$0xff] }
 0x3c0   :  { %2760 = vmatpush3.msra.mxu0 %v916_v17  ;;  %v2962_v17 = vld [vmem:[%s4595_s12 + $0xc4] ss:$16 sps:$4 sm:$0xff]  }
 0x3c1   :  { %v697_v19 = vsub.f32 %v692_v16, %v695_v29  ;;  %v931_v29 = vld [vmem:[%s4594_s11 + $0xc8] sm:$0xff] }
 0x3c2   :  { %2761 = vmatprep.subr.mxu0 %v931_v29  ;;  %v2965_v29 = vld [vmem:[%s4595_s12 + $0xcc] ss:$16 sps:$4 sm:$0xff]  }
 0x3c3   :  { %v698_v18 = vadd.f32 1e-05, %v697_v19  ;;  %v930_v19 = vld [vmem:[%s4594_s11 + $0xc0] sm:$0xff] }
 0x3c5   :  { %3148 = vrsqrt.f32 %v698_v18  ;;  %v914_v18 = vld [vmem:[%s4594_s11 + $0x40] sm:$0xff] }
 0x3d2   :  { %v3149_v28 = vpop.eup %3148 }
 0x3d3   :  { %v707_v20 = vrot.slane %v3149_v28, %v3639_v25  ;;  %v911_v28 = vld [vmem:[%s4594_s11 + $0x28] sm:$0xff] }
 0x3d5   :  { %v708_v35 = vcombine.high %v707_v20, %v707_v20  ;;  %v926_v20 = vld [vmem:[%s4594_s11 + $0xa0] sm:$0xff] }
 0x3d7   :  { %v715_v31 = vrot.slane %v708_v35, %v3639_v25  ;;  %v909_v35 = vld [vmem:[%s4594_s11 + $0x18] sm:$0xff] }
 0x3d9   :  { %v717_v38 = vmul.f32 %v715_v31, %v588_v21  ;;  %v924_v21 = vld [vmem:[%s4594_s11 + $0x90] sm:$0xff] }
 0x3da   :  { %v908_v31 = vld [vmem:[%s4594_s11 + $0x10] sm:$0xff] }
 0x3db   :  { %v718_v42 = vmul.f32 %v717_v38, %v692_v16  ;;  %v724_v43 = vrot.slane %v717_v38, %v3659_v36 }
 0x3dd   :  { %725 = vrot.lane.b32.xlu1 %v724_v43, %s3180_s20  ;;  %v719_v45 = vsub.f32 %v589_v40, %v718_v42  ;;  %v906_v40 = vld [vmem:[%s4594_s11] sm:$0xff] }
 0x3df   :  { %v742_v46 = vrot.slane %v719_v45, %v3659_v36 }
 0x3e1   :  { %728 = vrot.lane.b32.xlu1 %v724_v43, %s3181_s23  ;;  %743 = vrot.lane.b32.xlu0 %v742_v46, %s3180_s20 }
 0x3e5   :  { %731 = vrot.lane.b32.xlu1 %v724_v43, %s3178_s28  ;;  %749 = vrot.lane.b32.xlu0 %v742_v46, %s3178_s28 }
 0x3e9   :  { %746 = vrot.lane.b32.xlu1 %v742_v46, %s3181_s23 }
 0x44f   :  { %v726_v63 = vpop.permute.xlu1 %725 }
 0x450   :  { %v734_v0 = vsel %vm445_vm12, %v717_v38, %v726_v63  ;;  %v907_v38 = vld [vmem:[%s4594_s11 + $0x8] sm:$0xff] }
 0x453   :  { %v729_v1 = vpop.permute.xlu1 %728  ;;  %v744_v2 = vpop.permute.xlu0 %743 }
 0x454   :  { %v735_v3 = vsel %vm98_vm0, %v734_v0, %v729_v1  ;;  %v752_v7 = vsel %vm445_vm12, %v719_v45, %v744_v2 }
 0x457   :  { %v732_v4 = vpop.permute.xlu1 %731  ;;  %v750_v9 = vpop.permute.xlu0 %749 }
 0x458   :  { %v737_v5 = vsel %vm736_vm15, %v735_v3, %v732_v4 }
 0x459   :  { %v758_v6 = vrot.slane %v737_v5, %v3659_v36 }
 0x45b   :  { %v747_v8 = vpop.permute.xlu1 %746  ;;  %v759_v11 = vmul.f32 %v758_v6, %v3613_v54  ;;  %v915_v54 = vld [vmem:[%s4594_s11 + $0x48] sm:$0xff] }
 0x45c   :  { %v753_v10 = vsel %vm98_vm0, %v752_v7, %v747_v8  ;;  %2762 = vmatpush3.msra.mxu0 %v915_v54  ;;  %v2960_v54 = vld [vmem:[%s4595_s12 + $0xc0] ss:$16 sps:$4 sm:$0xff]  }
 0x45d   :  { %v754_v34 = vsel %vm736_vm15, %v753_v10, %v750_v9  ;;  %2763 = vmatprep.subr.mxu0 %v930_v19  ;;  %v2963_v19 = vld [vmem:[%s4595_s12 + $0xc8] ss:$16 sps:$4 sm:$0xff]  }
 0x45e   :  { %v763_v13 = vrot.slane %v754_v34, %v3659_v36  ;;  %2764 = vmatpush3.msra.mxu0 %v914_v18  ;;  %v2968_v18 = vld [vmem:[%s4595_s12 + $0xa4] ss:$16 sps:$4 sm:$0xff]  }
 0x45f   :  { %2765 = vmatprep.subr.mxu0 %v929_v37  ;;  %v2971_v37 = vld [vmem:[%s4595_s12 + $0xac] ss:$16 sps:$4 sm:$0xff]  }
 0x460   :  { %v764_v14 = vadd.f32 %v763_v13, %v759_v11  ;;  %2766 = vmatpush3.msra.mxu0 %v913_v41  ;;  %v2954_v13 = vld [vmem:[%s4595_s12 + $0xe0] ss:$16 sps:$4 sm:$0xff]  }
 0x461   :  { %2767 = vmatprep.subr.mxu0 %v928_v22  ;;  %v2966_v41 = vld [vmem:[%s4595_s12 + $0xa0] ss:$16 sps:$4 sm:$0xff]   ;;  %v2969_v22 = vld [vmem:[%s4595_s12 + $0xa8] ss:$16 sps:$4 sm:$0xff]  }
 0x462   :  { %v765_v16 = vmax.f32 %v764_v14, 0.0  ;;  %2768 = vmatpush3.msra.mxu0 %v912_v26  ;;  %v2956_v14 = vld [vmem:[%s4595_s12 + $0xe4] ss:$16 sps:$4 sm:$0xff]  }
 0x463   :  { %2769 = vmatprep.subr.mxu0 %v927_v27  ;;  %1536 = vmatprep.subr.bf16.mxu1 %v2956_v14  ;;  %v2974_v26 = vld [vmem:[%s4595_s12 + $0x84] ss:$16 sps:$4 sm:$0xff]   ;;  %v2977_v27 = vld [vmem:[%s4595_s12 + $0x8c] ss:$16 sps:$4 sm:$0xff]   ;;  %v905_v14 = vld [vmem:[%s4593_s10] sm:$0x1] }
 0x464   :  { %v766_v12 = vpack.c.bf16 %v765_v16, %v765_v16  ;;  %2770 = vmatpush3.msra.mxu0 %v911_v28  ;;  %v2957_v16 = vld [vmem:[%s4595_s12 + $0xe8] ss:$16 sps:$4 sm:$0xff]   ;;  %v2972_v28 = vld [vmem:[%s4595_s12 + $0x80] ss:$16 sps:$4 sm:$0xff]   ;;  %s3183_s10 = smov 16  }
 0x465   :  { %2771 = vmatprep.subr.mxu0 %v926_v20  ;;  %v2975_v20 = vld [vmem:[%s4595_s12 + $0x88] ss:$16 sps:$4 sm:$0xff]  }
 0x466   :  { %896 = vmatmul.mubr.bf16.vlgmr.msra.gmra.mxu1 %v766_v12  ;;  %2772 = vmatpush3.msra.mxu0 %v910_v32  ;;  %v2959_v12 = vld [vmem:[%s4595_s12 + $0xec] ss:$16 sps:$4 sm:$0xff]   ;;  %v2980_v32 = vld [vmem:[%s4595_s12 + $0x64] ss:$16 sps:$4 sm:$0xff]  }
 0x467   :  { %2773 = vmatprep.subr.mxu0 %v925_v33  ;;  %1537 = vmatpush1.bf16.msra.mxu1 %v2954_v13  ;;  %v2983_v33 = vld [vmem:[%s4595_s12 + $0x6c] ss:$16 sps:$4 sm:$0xff]  }
 0x468   :  { %2774 = vmatpush3.msra.mxu0 %v909_v35  ;;  %1538 = vmatprep.subr.bf16.mxu1 %v2962_v17  ;;  %v2978_v35 = vld [vmem:[%s4595_s12 + $0x60] ss:$16 sps:$4 sm:$0xff]   ;;  %v3019_v13 = vld [vmem:[%s4595_s12 + $0x1ac] ss:$16 sps:$4 sm:$0xff]  }
 0x469   :  { %2775 = vmatprep.subr.mxu0 %v924_v21  ;;  %v2981_v21 = vld [vmem:[%s4595_s12 + $0x68] ss:$16 sps:$4 sm:$0xff]   ;;  %v3020_v17 = vld [vmem:[%s4595_s12 + $0x180] ss:$16 sps:$4 sm:$0xff]  }
 0x46a   :  { %2776 = vmatpush3.msra.mxu0 %v908_v31  ;;  %v2986_v31 = vld [vmem:[%s4595_s12 + $0x44] ss:$16 sps:$4 sm:$0xff]  }
 0x46b   :  { %2777 = vmatprep.subr.mxu0 %v923_v24  ;;  %1539 = vmatpush1.bf16.msra.mxu1 %v2960_v54  ;;  %v2989_v24 = vld [vmem:[%s4595_s12 + $0x4c] ss:$16 sps:$4 sm:$0xff]   ;;  %v3023_v54 = vld [vmem:[%s4595_s12 + $0x188] ss:$16 sps:$4 sm:$0xff]  }
 0x46c   :  { %2778 = vmatpush3.msra.mxu0 %v907_v38  ;;  %1540 = vmatprep.subr.bf16.mxu1 %v2968_v18  ;;  %v2984_v38 = vld [vmem:[%s4595_s12 + $0x40] ss:$16 sps:$4 sm:$0xff]   ;;  %v3025_v18 = vld [vmem:[%s4595_s12 + $0x18c] ss:$16 sps:$4 sm:$0xff]  }
 0x46d   :  { %2779 = vmatprep.subr.mxu0 %v922_v39  ;;  %v2987_v39 = vld [vmem:[%s4595_s12 + $0x48] ss:$16 sps:$4 sm:$0xff]  }
 0x46e   :  { %2780 = vmatpush3.msra.mxu0 %v906_v40  ;;  %v2992_v40 = vld [vmem:[%s4595_s12 + $0x24] ss:$16 sps:$4 sm:$0xff]  }
 0x46f   :  { %1577 = vmatprep.subr.bf16.mxu0 %v2959_v12  ;;  %1541 = vmatpush1.bf16.msra.mxu1 %v2966_v41  ;;  %v3026_v41 = vld [vmem:[%s4595_s12 + $0x160] ss:$16 sps:$4 sm:$0xff]  }
 0x470   :  { %1542 = vmatprep.subr.bf16.mxu1 %v2974_v26  ;;  %v3029_v26 = vld [vmem:[%s4595_s12 + $0x168] ss:$16 sps:$4 sm:$0xff]  }
 0x473   :  { %1543 = vmatpush1.bf16.msra.mxu1 %v2972_v28  ;;  %v3034_v28 = vld [vmem:[%s4595_s12 + $0x144] ss:$16 sps:$4 sm:$0xff]  }
 0x474   :  { %1544 = vmatprep.subr.bf16.mxu1 %v2980_v32  ;;  %v3032_v32 = vld [vmem:[%s4595_s12 + $0x140] ss:$16 sps:$4 sm:$0xff]  }
 0x477   :  { %1545 = vmatpush1.bf16.msra.mxu1 %v2978_v35  ;;  %v3040_v35 = vld [vmem:[%s4595_s12 + $0x124] ss:$16 sps:$4 sm:$0xff]  }
 0x478   :  { %1546 = vmatprep.subr.bf16.mxu1 %v2986_v31  ;;  %v3038_v31 = vld [vmem:[%s4595_s12 + $0x120] ss:$16 sps:$4 sm:$0xff]  }
 0x47b   :  { %1547 = vmatpush1.bf16.msra.mxu1 %v2984_v38  ;;  %v3046_v38 = vld [vmem:[%s4595_s12 + $0x104] ss:$16 sps:$4 sm:$0xff]  }
 0x47c   :  { %1548 = vmatprep.subr.bf16.mxu1 %v2992_v40  ;;  %v3044_v40 = vld [vmem:[%s4595_s12 + $0x100] ss:$16 sps:$4 sm:$0xff]  }
 0x526   :  { %v897_v42 = vpop.f32.mrf.mxu1 }
 0x527   :  { %v3796_v43 = vmul.f32 %v3610_v52, %v897_v42  ;;  %v2995_v42 = vld [vmem:[%s4595_s12 + $0x2c] ss:$16 sps:$4 sm:$0xff]  }
 0x528   :  { %v899_v44 = vpop.f32.mrf.mxu1 }
 0x529   :  { %v940_v45 = vrot.slane %v3796_v43, 4  ;;  %v952_v30 = vmul.f32 %v3796_v43, %v3796_v43  ;;  %v3802_v46 = vmul.f32 %v3610_v52, %v899_v44  ;;  %v2990_v44 = vld [vmem:[%s4595_s12 + $0x20] ss:$16 sps:$4 sm:$0xff]  }
 0x52a   :  { %v901_v47 = vpop.f32.mrf.mxu1  ;;  %1549 = vmatpush1.bf16.msra.mxu1 %v2990_v44  ;;  %v1651_v44 = vld [vmem:[%s4598_s15 + $0xf8] sm:$0xff] }
 0x52b   :  { %v941_v48 = vadd.f32 %v940_v45, %v3796_v43  ;;  %v954_v49 = vrot.slane %v952_v30, 4  ;;  %v946_v50 = vrot.slane %v3802_v46, 4  ;;  %v953_v51 = vmul.f32 %v3802_v46, %v3802_v46  ;;  %v2993_v45 = vld [vmem:[%s4595_s12 + $0x28] ss:$16 sps:$4 sm:$0xff]   ;;  %v3001_v47 = vld [vmem:[%s4595_s12 + $0xc] ss:$16 sps:$4 sm:$0xff]  }
 0x52c   :  { %v902_v53 = vpop.f32.mrf.mxu1 }
 0x52d   :  { %v942_v55 = vrot.slane %v941_v48, 2  ;;  %v955_v56 = vadd.f32 %v954_v49, %v952_v30  ;;  %v947_v57 = vadd.f32 %v946_v50, %v3802_v46  ;;  %v960_v58 = vrot.slane %v953_v51, 4  ;;  %v2998_v30 = vld [vmem:[%s4595_s12 + $0x4] ss:$16 sps:$4 sm:$0xff]   ;;  %v2999_v49 = vld [vmem:[%s4595_s12 + $0x8] ss:$16 sps:$4 sm:$0xff]  }
 0x52e   :  { %1550 = vmatprep.subr.bf16.mxu1 %v2998_v30 }
 0x52f   :  { %v948_v59 = vrot.slane %v947_v57, 2  ;;  %v961_v60 = vadd.f32 %v960_v58, %v953_v51  ;;  %v956_v61 = vrot.slane %v955_v56, 2  ;;  %v943_v62 = vadd.f32 %v942_v55, %v941_v48  ;;  %v2996_v48 = vld [vmem:[%s4595_s12] ss:$16 sps:$4 sm:$0xff]  }
 0x530   :  { %1551 = vmatpush1.bf16.msra.mxu1 %v2996_v48 }
 0x531   :  { %v949_v63 = vadd.f32 %v948_v59, %v947_v57  ;;  %v962_v1 = vrot.slane %v961_v60, 2  ;;  %v957_v0 = vadd.f32 %v956_v61, %v955_v56  ;;  %v944_v5 = vrot.slane %v943_v62, 1  ;;  %v3004_v61 = vld [vmem:[%s4595_s12 + $0x1e4] ss:$16 sps:$4 sm:$0xff]  }
 0x532   :  { %1552 = vmatprep.subr.bf16.mxu1 %v3004_v61 }
 0x533   :  { %v950_v2 = vrot.slane %v949_v63, 1  ;;  %v963_v3 = vadd.f32 %v962_v1, %v961_v60  ;;  %v958_v4 = vrot.slane %v957_v0, 1  ;;  %v945_v10 = vadd.f32 %v944_v5, %v943_v62  ;;  %v3002_v60 = vld [vmem:[%s4595_s12 + $0x1e0] ss:$16 sps:$4 sm:$0xff]   ;;  %v3005_v62 = vld [vmem:[%s4595_s12 + $0x1e8] ss:$16 sps:$4 sm:$0xff]  }
 0x534   :  { %1553 = vmatpush2.bf16.msra.mxu1 %v3002_v60 }
 0x535   :  { %v964_v6 = vrot.slane %v963_v3, 1  ;;  %v959_v7 = vadd.f32 %v958_v4, %v957_v0  ;;  %v951_v8 = vadd.f32 %v950_v2, %v949_v63  ;;  %v3007_v63 = vld [vmem:[%s4595_s12 + $0x1ec] ss:$16 sps:$4 sm:$0xff]   ;;  %v3008_v2 = vld [vmem:[%s4595_s12 + $0x1c0] ss:$16 sps:$4 sm:$0xff]  }
 0x536   :  { %v3011_v4 = vld [vmem:[%s4595_s12 + $0x1c8] ss:$16 sps:$4 sm:$0xff]  }
 0x537   :  { %v965_v9 = vadd.f32 %v964_v6, %v963_v3  ;;  %v966_v11 = vsel %vm620_vm14, %v945_v10, %v959_v7  ;;  %v3010_v3 = vld [vmem:[%s4595_s12 + $0x1c4] ss:$16 sps:$4 sm:$0xff]   ;;  %v3013_v6 = vld [vmem:[%s4595_s12 + $0x1cc] ss:$16 sps:$4 sm:$0xff]   ;;  %v904_v7 = vld [vmem:[%s4592_s9] sm:$0x1] }
 0x538   :  { %1554 = vmatprep.subr.bf16.mxu1 %v3010_v3  ;;  %v3016_v10 = vld [vmem:[%s4595_s12 + $0x1a4] ss:$16 sps:$4 sm:$0xff]  }
 0x539   :  { %v967_v34 = vsel %vm620_vm14, %v951_v8, %v965_v9  ;;  %1555 = vmatpush2.bf16.msra.mxu1 %v3008_v2  ;;  %v3014_v9 = vld [vmem:[%s4595_s12 + $0x1a0] ss:$16 sps:$4 sm:$0xff]  }
 0x53a   :  { %1032 = vmatprep.mubr.f32.mxu0 %v967_v34  ;;  %v3017_v34 = vld [vmem:[%s4595_s12 + $0x1a8] ss:$16 sps:$4 sm:$0xff]   ;;  %1556 = vmatprep.subr.bf16.mxu1 %v3016_v10 }
 0x53b   :  { %1033 = vmatmul.mubr.f32.vlgmr.msra.gmra.mxu0 %v966_v11 }
 0x53c   :  { %1578 = vmatpush1.bf16.msra.mxu0 %v2957_v16 }
 0x53d   :  { %1579 = vmatprep.subr.bf16.mxu0 %v2965_v29  ;;  %1557 = vmatpush2.bf16.msra.mxu1 %v3014_v9  ;;  %v3022_v29 = vld [vmem:[%s4595_s12 + $0x184] ss:$16 sps:$4 sm:$0xff]  }
 0x53e   :  { %1558 = vmatprep.subr.bf16.mxu1 %v3022_v29 }
 0x540   :  { %1580 = vmatpush1.bf16.msra.mxu0 %v2963_v19 }
 0x541   :  { %1581 = vmatprep.subr.bf16.mxu0 %v2971_v37  ;;  %1559 = vmatpush2.bf16.msra.mxu1 %v3020_v17 }
 0x544   :  { %1582 = vmatpush1.bf16.msra.mxu0 %v2969_v22  ;;  %v3028_v22 = vld [vmem:[%s4595_s12 + $0x164] ss:$16 sps:$4 sm:$0xff]  }
 0x545   :  { %1583 = vmatprep.subr.bf16.mxu0 %v2977_v27  ;;  %v3031_v27 = vld [vmem:[%s4595_s12 + $0x16c] ss:$16 sps:$4 sm:$0xff]   ;;  %1560 = vmatprep.subr.bf16.mxu1 %v3028_v22  ;;  %v1634_v22 = vld [vmem:[%s4598_s15 + $0x70] sm:$0xff] }
 0x546   :  { %1561 = vmatpush2.bf16.msra.mxu1 %v3026_v41  ;;  %v1667_v41 = vld [vmem:[%s4598_s15 + $0x178] sm:$0xff] }
 0x547   :  { %1562 = vmatprep.subr.bf16.mxu1 %v3034_v28  ;;  %v1681_v28 = vld [vmem:[%s4598_s15 + $0x1e8] sm:$0xff] }
 0x548   :  { %1584 = vmatpush1.bf16.msra.mxu0 %v2975_v20  ;;  %v3037_v20 = vld [vmem:[%s4595_s12 + $0x14c] ss:$16 sps:$4 sm:$0xff]  }
 0x549   :  { %1585 = vmatprep.subr.bf16.mxu0 %v2983_v33  ;;  %v3035_v33 = vld [vmem:[%s4595_s12 + $0x148] ss:$16 sps:$4 sm:$0xff]  }
 0x54a   :  { %1563 = vmatpush2.bf16.msra.mxu1 %v3032_v32  ;;  %v1665_v32 = vld [vmem:[%s4598_s15 + $0x168] sm:$0xff] }
 0x54b   :  { %1564 = vmatprep.subr.bf16.mxu1 %v3040_v35  ;;  %v1680_v35 = vld [vmem:[%s4598_s15 + $0x1e0] sm:$0xff] }
 0x54c   :  { %1586 = vmatpush1.bf16.msra.mxu0 %v2981_v21  ;;  %v3043_v21 = vld [vmem:[%s4595_s12 + $0x12c] ss:$16 sps:$4 sm:$0xff]  }
 0x54d   :  { %1587 = vmatprep.subr.bf16.mxu0 %v2989_v24  ;;  %v3041_v24 = vld [vmem:[%s4595_s12 + $0x128] ss:$16 sps:$4 sm:$0xff]  }
 0x54e   :  { %1565 = vmatpush2.bf16.msra.mxu1 %v3038_v31  ;;  %v1664_v31 = vld [vmem:[%s4598_s15 + $0x160] sm:$0xff] }
 0x54f   :  { %1566 = vmatprep.subr.bf16.mxu1 %v3046_v38  ;;  %v1679_v38 = vld [vmem:[%s4598_s15 + $0x1d8] sm:$0xff] }
 0x550   :  { %1588 = vmatpush1.bf16.msra.mxu0 %v2987_v39  ;;  %v3049_v39 = vld [vmem:[%s4595_s12 + $0x10c] ss:$16 sps:$4 sm:$0xff]  }
 0x551   :  { %1589 = vmatprep.subr.bf16.mxu0 %v2995_v42  ;;  %v3047_v42 = vld [vmem:[%s4595_s12 + $0x108] ss:$16 sps:$4 sm:$0xff]   ;;  %s3188_s12 = smov 24  }
 0x552   :  { %1567 = vmatpush2.bf16.msra.mxu1 %v3044_v40  ;;  %v1663_v40 = vld [vmem:[%s4598_s15 + $0x158] sm:$0xff] }
 0x553   :  { %2784 = vmatprep.subr.mxu1 %v1651_v44  ;;  %v1678_v44 = vld [vmem:[%s4598_s15 + $0x1d0] sm:$0xff] }
 0x554   :  { %1590 = vmatpush1.bf16.msra.mxu0 %v2993_v45  ;;  %v1683_v45 = vld [vmem:[%s4598_s15 + $0x1f8] sm:$0xff] }
 0x555   :  { %1591 = vmatprep.subr.bf16.mxu0 %v3001_v47 }
 0x558   :  { %1592 = vmatpush1.bf16.msra.mxu0 %v2999_v49 }
 0x559   :  { %1593 = vmatprep.subr.bf16.mxu0 %v3007_v63 }
 0x55c   :  { %1594 = vmatpush2.bf16.msra.mxu0 %v3005_v62 }
 0x55d   :  { %1595 = vmatprep.subr.bf16.mxu0 %v3013_v6 }
 0x560   :  { %1596 = vmatpush2.bf16.msra.mxu0 %v3011_v4 }
 0x561   :  { %1597 = vmatprep.subr.bf16.mxu0 %v3019_v13 }
 0x564   :  { %1598 = vmatpush2.bf16.msra.mxu0 %v3017_v34 }
 0x565   :  { %1599 = vmatprep.subr.bf16.mxu0 %v3025_v18 }
 0x568   :  { %1600 = vmatpush2.bf16.msra.mxu0 %v3023_v54 }
 0x569   :  { %1601 = vmatprep.subr.bf16.mxu0 %v3031_v27  ;;  %v1649_v27 = vld [vmem:[%s4598_s15 + $0xe8] sm:$0xff] }
 0x56c   :  { %1602 = vmatpush2.bf16.msra.mxu0 %v3029_v26  ;;  %v1666_v26 = vld [vmem:[%s4598_s15 + $0x170] sm:$0xff] }
 0x56d   :  { %1603 = vmatprep.subr.bf16.mxu0 %v3037_v20  ;;  %v1633_v20 = vld [vmem:[%s4598_s15 + $0x68] sm:$0xff] }
 0x570   :  { %1604 = vmatpush2.bf16.msra.mxu0 %v3035_v33  ;;  %v1648_v33 = vld [vmem:[%s4598_s15 + $0xe0] sm:$0xff] }
 0x571   :  { %1605 = vmatprep.subr.bf16.mxu0 %v3043_v21  ;;  %v1632_v21 = vld [vmem:[%s4598_s15 + $0x60] sm:$0xff] }
 0x574   :  { %1606 = vmatpush2.bf16.msra.mxu0 %v3041_v24  ;;  %v1647_v24 = vld [vmem:[%s4598_s15 + $0xd8] sm:$0xff] }
 0x575   :  { %1607 = vmatprep.subr.bf16.mxu0 %v3049_v39  ;;  %v1631_v39 = vld [vmem:[%s4598_s15 + $0x58] sm:$0xff] }
 0x578   :  { %1608 = vmatpush2.bf16.msra.mxu0 %v3047_v42  ;;  %v1646_v42 = vld [vmem:[%s4598_s15 + $0xd0] sm:$0xff] }
 0x579   :  { %2819 = vmatprep.subr.mxu0 %v1683_v45  ;;  %v1630_v45 = vld [vmem:[%s4598_s15 + $0x50] sm:$0xff] }
 0x5fb   :  { %v2781_v50 = vpop.f32.mrf.mxu0 }
 0x5fd   :  { %v2782_v51 = vpop.f32.mrf.mxu0 }
 0x5fe   :  { %v2783_v53 = vadd.f32 %v2782_v51, %v2781_v50 }
 0x600   :  { %v1038_v55 = vmul.f32 0.03125, %v2783_v53 }
 0x602   :  { %v1039_v56 = vmul.f32 %v1038_v55, %v1038_v55 }
 0x604   :  { %v1041_v57 = vrot.slane %v1039_v56, 7 }
 0x606   :  { %v1043_v58 = vsub.f32 %v1038_v55, %v1041_v57 }
 0x608   :  { %v1044_v59 = vadd.f32 1e-05, %v1043_v58 }
 0x60a   :  { %3150 = vrsqrt.f32 %v1044_v59 }
 0x617   :  { %v3151_v1 = vpop.eup %3150 }
 0x618   :  { %v1053_v0 = vrot.slane %v3151_v1, %v3639_v25 }
 0x61a   :  { %v1054_v5 = vcombine.high %v1053_v0, %v1053_v0 }
 0x61c   :  { %v1061_v8 = vrot.slane %v1054_v5, %v3639_v25 }
 0x61e   :  { %v3945_v11 = vmul.f32 %v1061_v8, %v904_v7 }
 0x620   :  { %v1064_v16 = vmul.f32 %v3945_v11, %v1038_v55  ;;  %v1070_v12 = vrot.slane %v3945_v11, %v3659_v36 }
 0x622   :  { %v3965_v19 = vsub.f32 %v905_v14, %v1064_v16  ;;  %1074 = vrot.lane.b32.xlu0 %v1070_v12, %s3180_s20  ;;  %1071 = vrot.lane.b32.xlu1 %v1070_v12, %s3183_s10 }
 0x624   :  { %v1107_v37 = vrot.slane %v3965_v19, %v3659_v36 }
 0x626   :  { %1077 = vrot.lane.b32.xlu1 %v1070_v12, %s3184_s24  ;;  %1108 = vrot.lane.b32.xlu0 %v1107_v37, %s3183_s10 }
 0x62a   :  { %1080 = vrot.lane.b32.xlu1 %v1070_v12, %s3181_s23  ;;  %1111 = vrot.lane.b32.xlu0 %v1107_v37, %s3180_s20 }
 0x62e   :  { %1083 = vrot.lane.b32.xlu1 %v1070_v12, %s3185_s5  ;;  %1114 = vrot.lane.b32.xlu0 %v1107_v37, %s3184_s24 }
 0x632   :  { %1086 = vrot.lane.b32.xlu1 %v1070_v12, %s3178_s28  ;;  %1117 = vrot.lane.b32.xlu0 %v1107_v37, %s3181_s23 }
 0x636   :  { %1089 = vrot.lane.b32.xlu1 %v1070_v12, %s3186_s19  ;;  %1120 = vrot.lane.b32.xlu0 %v1107_v37, %s3185_s5 }
 0x63a   :  { %1123 = vrot.lane.b32.xlu1 %v1107_v37, %s3178_s28  ;;  %1126 = vrot.lane.b32.xlu0 %v1107_v37, %s3186_s19  ;;  %v1635_v37 = vld [vmem:[%s4598_s15 + $0x78] sm:$0xff] }
 0x694   :  { %v1075_v30 = vpop.permute.xlu0 %1074  ;;  %v1072_v47 = vpop.permute.xlu1 %1071 }
 0x695   :  { %v1093_v56 = vsel %vm1092_vm1, %v3945_v11, %v1072_v47  ;;  %v1645_v47 = vld [vmem:[%s4598_s15 + $0xc8] sm:$0xff] }
 0x696   :  { %v1094_v57 = vsel %vm445_vm12, %v1093_v56, %v1075_v30  ;;  %v1662_v30 = vld [vmem:[%s4598_s15 + $0x150] sm:$0xff]  ;;  %v1660_v56 = vld [vmem:[%s4598_s15 + $0x140] sm:$0xff] }
 0x698   :  { %v1078_v48 = vpop.permute.xlu1 %1077  ;;  %v1109_v49 = vpop.permute.xlu0 %1108 }
 0x699   :  { %v1096_v60 = vsel %vm1095_vm2, %v1094_v57, %v1078_v48  ;;  %v1129_v63 = vsel %vm1092_vm1, %v3965_v19, %v1109_v49  ;;  %v1677_v48 = vld [vmem:[%s4598_s15 + $0x1c8] sm:$0xff]  ;;  %v1643_v57 = vld [vmem:[%s4598_s15 + $0xb8] sm:$0xff] }
 0x69a   :  { %v1629_v49 = vld [vmem:[%s4598_s15 + $0x48] sm:$0xff] }
 0x69c   :  { %v1081_v50 = vpop.permute.xlu1 %1080  ;;  %v1112_v51 = vpop.permute.xlu0 %1111 }
 0x69d   :  { %v1097_v61 = vsel %vm98_vm0, %v1096_v60, %v1081_v50  ;;  %v1130_v3 = vsel %vm445_vm12, %v1129_v63, %v1112_v51  ;;  %v1661_v50 = vld [vmem:[%s4598_s15 + $0x148] sm:$0xff]  ;;  %v1644_v51 = vld [vmem:[%s4598_s15 + $0xc0] sm:$0xff]  ;;  %v1659_v60 = vld [vmem:[%s4598_s15 + $0x138] sm:$0xff] }
 0x69e   :  { %v1626_v63 = vld [vmem:[%s4598_s15 + $0x30] sm:$0xff] }
 0x6a0   :  { %v1084_v53 = vpop.permute.xlu1 %1083  ;;  %v1115_v55 = vpop.permute.xlu0 %1114 }
 0x6a1   :  { %v1099_v62 = vsel %vm1098_vm3, %v1097_v61, %v1084_v53  ;;  %v1131_v5 = vsel %vm1095_vm2, %v1130_v3, %v1115_v55  ;;  %v1676_v53 = vld [vmem:[%s4598_s15 + $0x1c0] sm:$0xff]  ;;  %v1642_v61 = vld [vmem:[%s4598_s15 + $0xb0] sm:$0xff]  ;;  %v1625_v3 = vld [vmem:[%s4598_s15 + $0x28] sm:$0xff] }
 0x6a2   :  { %v1628_v55 = vld [vmem:[%s4598_s15 + $0x40] sm:$0xff] }
 0x6a4   :  { %v1087_v58 = vpop.permute.xlu1 %1086  ;;  %v1118_v59 = vpop.permute.xlu0 %1117 }
 0x6a5   :  { %v1100_v1 = vsel %vm736_vm15, %v1099_v62, %v1087_v58  ;;  %v1132_v6 = vsel %vm98_vm0, %v1131_v5, %v1118_v59  ;;  %v1675_v58 = vld [vmem:[%s4598_s15 + $0x1b8] sm:$0xff]  ;;  %v1674_v62 = vld [vmem:[%s4598_s15 + $0x1b0] sm:$0xff]  ;;  %v1640_v5 = vld [vmem:[%s4598_s15 + $0xa0] sm:$0xff] }
 0x6a6   :  { %v1627_v59 = vld [vmem:[%s4598_s15 + $0x38] sm:$0xff] }
 0x6a8   :  { %v1090_v0 = vpop.permute.xlu1 %1089  ;;  %v1121_v2 = vpop.permute.xlu0 %1120 }
 0x6a9   :  { %v1102_v4 = vsel %vm1101_vm4, %v1100_v1, %v1090_v0  ;;  %v1133_v8 = vsel %vm1098_vm3, %v1132_v6, %v1121_v2  ;;  %v1658_v1 = vld [vmem:[%s4598_s15 + $0x130] sm:$0xff]  ;;  %v1641_v0 = vld [vmem:[%s4598_s15 + $0xa8] sm:$0xff]  ;;  %v1672_v6 = vld [vmem:[%s4598_s15 + $0x1a0] sm:$0xff] }
 0x6aa   :  { %v1139_v7 = vrot.slane %v1102_v4, %v3659_v36  ;;  %v1673_v2 = vld [vmem:[%s4598_s15 + $0x1a8] sm:$0xff] }
 0x6ab   :  { %v1657_v4 = vld [vmem:[%s4598_s15 + $0x128] sm:$0xff] }
 0x6ac   :  { %v1124_v9 = vpop.permute.xlu1 %1123  ;;  %v1127_v10 = vpop.permute.xlu0 %1126  ;;  %v1140_v13 = vmul.f32 %v1139_v7, %v3796_v43  ;;  %v1141_v14 = vmul.f32 %v1139_v7, %v3802_v46  ;;  %v1650_v43 = vld [vmem:[%s4598_s15 + $0xf0] sm:$0xff]  ;;  %v1624_v7 = vld [vmem:[%s4598_s15 + $0x20] sm:$0xff] }
 0x6ad   :  { %v1134_v34 = vsel %vm736_vm15, %v1133_v8, %v1124_v9  ;;  %v1682_v46 = vld [vmem:[%s4598_s15 + $0x1f0] sm:$0xff]  ;;  %v1656_v8 = vld [vmem:[%s4598_s15 + $0x120] sm:$0xff]  ;;  %v1639_v9 = vld [vmem:[%s4598_s15 + $0x98] sm:$0xff] }
 0x6ae   :  { %v1135_v11 = vsel %vm1101_vm4, %v1134_v34, %v1127_v10  ;;  %v1671_v10 = vld [vmem:[%s4598_s15 + $0x198] sm:$0xff] }
 0x6af   :  { %v1145_v16 = vrot.slane %v1135_v11, %v3659_v36  ;;  %v1623_v34 = vld [vmem:[%s4598_s15 + $0x18] sm:$0xff] }
 0x6b0   :  { %v1655_v11 = vld [vmem:[%s4598_s15 + $0x118] sm:$0xff] }
 0x6b1   :  { %v1146_v12 = vadd.f32 %v1145_v16, %v1140_v13  ;;  %v1147_v17 = vadd.f32 %v1145_v16, %v1141_v14  ;;  %v1638_v13 = vld [vmem:[%s4598_s15 + $0x90] sm:$0xff] }
 0x6b2   :  { %v1670_v14 = vld [vmem:[%s4598_s15 + $0x190] sm:$0xff] }
 0x6b3   :  { %v1148_v29 = vmax.f32 %v1146_v12, 0.0  ;;  %v1149_v54 = vmax.f32 %v1147_v17, 0.0  ;;  %v1622_v16 = vld [vmem:[%s4598_s15 + $0x10] sm:$0xff]  ;;  %v1637_v17 = vld [vmem:[%s4598_s15 + $0x88] sm:$0xff] }
 0x6b4   :  { %v1654_v12 = vld [vmem:[%s4598_s15 + $0x110] sm:$0xff] }
 0x6b5   :  { %v1150_v19 = vpack.c.bf16 %v1148_v29, %v1148_v29  ;;  %v1151_v18 = vpack.c.bf16 %v1149_v54, %v1149_v54  ;;  %v1669_v29 = vld [vmem:[%s4598_s15 + $0x188] sm:$0xff] }
 0x6b6   :  { %v1621_v54 = vld [vmem:[%s4598_s15 + $0x8] sm:$0xff] }
 0x6b7   :  { %1568 = vmatprep.mubr.bf16.mxu1 %v1151_v18  ;;  %1609 = vmatprep.mubr.bf16.mxu0 %v1151_v18  ;;  %v1636_v18 = vld [vmem:[%s4598_s15 + $0x80] sm:$0xff] }
 0x6b8   :  { %1569 = vmatmul.mubr.bf16.vlgmr.msra.gmra.mxu1 %v1150_v19  ;;  %1610 = vmatmul.mubr.bf16.vlgmr.msra.gmra.mxu0 %v1150_v19  ;;  %v1653_v19 = vld [vmem:[%s4598_s15 + $0x108] sm:$0xff] }
 0x6b9   :  { %2785 = vmatpush3.msra.mxu1 %v1635_v37  ;;  %2820 = vmatpush3.msra.mxu0 %v1667_v41  ;;  %v1668_v37 = vld [vmem:[%s4598_s15 + $0x180] sm:$0xff] }
 0x6ba   :  { %2786 = vmatprep.subr.mxu1 %v1650_v43  ;;  %2821 = vmatprep.subr.mxu0 %v1682_v46  ;;  %v1620_v41 = vld [vmem:[%s4598_s15] sm:$0xff] }
 0x6bb   :  { %2787 = vmatpush3.msra.mxu1 %v1634_v22  ;;  %2822 = vmatpush3.msra.mxu0 %v1666_v26  ;;  %v1652_v43 = vld [vmem:[%s4598_s15 + $0x100] sm:$0xff] }
 0x6bc   :  { %2788 = vmatprep.subr.mxu1 %v1649_v27  ;;  %2823 = vmatprep.subr.mxu0 %v1681_v28 }
 0x6bd   :  { %2789 = vmatpush3.msra.mxu1 %v1633_v20  ;;  %2824 = vmatpush3.msra.mxu0 %v1665_v32 }
 0x6be   :  { %2790 = vmatprep.subr.mxu1 %v1648_v33  ;;  %2825 = vmatprep.subr.mxu0 %v1680_v35 }
 0x6bf   :  { %2791 = vmatpush3.msra.mxu1 %v1632_v21  ;;  %2826 = vmatpush3.msra.mxu0 %v1664_v31 }
 0x6c0   :  { %2792 = vmatprep.subr.mxu1 %v1647_v24  ;;  %2827 = vmatprep.subr.mxu0 %v1679_v38 }
 0x6c1   :  { %2793 = vmatpush3.msra.mxu1 %v1631_v39  ;;  %2828 = vmatpush3.msra.mxu0 %v1663_v40 }
 0x6c2   :  { %2794 = vmatprep.subr.mxu1 %v1646_v42  ;;  %2829 = vmatprep.subr.mxu0 %v1678_v44 }
 0x6c3   :  { %2795 = vmatpush3.msra.mxu1 %v1630_v45  ;;  %2830 = vmatpush3.msra.mxu0 %v1662_v30 }
 0x6c4   :  { %2796 = vmatprep.subr.mxu1 %v1645_v47  ;;  %2831 = vmatprep.subr.mxu0 %v1677_v48 }
 0x6c5   :  { %2797 = vmatpush3.msra.mxu1 %v1629_v49  ;;  %2832 = vmatpush3.msra.mxu0 %v1661_v50 }
 0x6c6   :  { %2798 = vmatprep.subr.mxu1 %v1644_v51  ;;  %2833 = vmatprep.subr.mxu0 %v1676_v53 }
 0x6c7   :  { %2799 = vmatpush3.msra.mxu1 %v1628_v55  ;;  %2834 = vmatpush3.msra.mxu0 %v1660_v56 }
 0x6c8   :  { %2800 = vmatprep.subr.mxu1 %v1643_v57  ;;  %2835 = vmatprep.subr.mxu0 %v1675_v58 }
 0x6c9   :  { %2801 = vmatpush3.msra.mxu1 %v1627_v59  ;;  %2836 = vmatpush3.msra.mxu0 %v1659_v60 }
 0x6ca   :  { %2802 = vmatprep.subr.mxu1 %v1642_v61  ;;  %2837 = vmatprep.subr.mxu0 %v1674_v62 }
 0x6cb   :  { %2803 = vmatpush3.msra.mxu1 %v1626_v63  ;;  %2838 = vmatpush3.msra.mxu0 %v1658_v1 }
 0x6cc   :  { %2804 = vmatprep.subr.mxu1 %v1641_v0  ;;  %2839 = vmatprep.subr.mxu0 %v1673_v2 }
 0x6cd   :  { %2805 = vmatpush3.msra.mxu1 %v1625_v3  ;;  %2840 = vmatpush3.msra.mxu0 %v1657_v4 }
 0x6ce   :  { %2806 = vmatprep.subr.mxu1 %v1640_v5  ;;  %2841 = vmatprep.subr.mxu0 %v1672_v6 }
 0x6cf   :  { %2807 = vmatpush3.msra.mxu1 %v1624_v7  ;;  %2842 = vmatpush3.msra.mxu0 %v1656_v8 }
 0x6d0   :  { %2808 = vmatprep.subr.mxu1 %v1639_v9  ;;  %2843 = vmatprep.subr.mxu0 %v1671_v10 }
 0x6d1   :  { %2809 = vmatpush3.msra.mxu1 %v1623_v34  ;;  %2844 = vmatpush3.msra.mxu0 %v1655_v11 }
 0x6d2   :  { %2810 = vmatprep.subr.mxu1 %v1638_v13  ;;  %2845 = vmatprep.subr.mxu0 %v1670_v14 }
 0x6d3   :  { %2811 = vmatpush3.msra.mxu1 %v1622_v16  ;;  %2846 = vmatpush3.msra.mxu0 %v1654_v12 }
 0x6d4   :  { %2812 = vmatprep.subr.mxu1 %v1637_v17  ;;  %2847 = vmatprep.subr.mxu0 %v1669_v29 }
 0x6d5   :  { %2813 = vmatpush3.msra.mxu1 %v1621_v54  ;;  %2848 = vmatpush3.msra.mxu0 %v1653_v19 }
 0x6d6   :  { %2814 = vmatprep.subr.mxu1 %v1636_v18  ;;  %2849 = vmatprep.subr.mxu0 %v1668_v37 }
 0x6d7   :  { %2815 = vmatpush3.msra.mxu1 %v1620_v41  ;;  %2850 = vmatpush3.msra.mxu0 %v1652_v43 }
 0x778   :  { %v1570_v46 = vpop.f32.mrf.mxu1  ;;  %v1611_v22 = vpop.f32.mrf.mxu0 }
 0x779   :  { %v4247_v26 = vmul.f32 %v3610_v52, %v1570_v46  ;;  %v4250_v27 = vmul.f32 %v3610_v52, %v1611_v22 }
 0x77a   :  { %v1572_v28 = vpop.f32.mrf.mxu1  ;;  %v1613_v20 = vpop.f32.mrf.mxu0 }
 0x77b   :  { %v1688_v32 = vrot.slane %v4247_v26, 4  ;;  %v1712_v33 = vmul.f32 %v4247_v26, %v4247_v26  ;;  %v1700_v35 = vrot.slane %v4250_v27, 4  ;;  %v1714_v21 = vmul.f32 %v4250_v27, %v4250_v27 }
 0x77c   :  { %v4259_v31 = vmul.f32 %v3610_v52, %v1572_v28  ;;  %v4262_v24 = vmul.f32 %v3610_v52, %v1613_v20  ;;  %v1574_v38 = vpop.f32.mrf.mxu1  ;;  %v1615_v39 = vpop.f32.mrf.mxu0 }
 0x77d   :  { %v1689_v40 = vadd.f32 %v1688_v32, %v4247_v26  ;;  %v1716_v42 = vrot.slane %v1712_v33, 4  ;;  %v1701_v44 = vadd.f32 %v1700_v35, %v4250_v27  ;;  %v1728_v45 = vrot.slane %v1714_v21, 4 }
 0x77e   :  { %v1694_v30 = vrot.slane %v4259_v31, 4  ;;  %v1713_v47 = vmul.f32 %v4259_v31, %v4259_v31  ;;  %v1706_v48 = vrot.slane %v4262_v24, 4  ;;  %v1715_v49 = vmul.f32 %v4262_v24, %v4262_v24  ;;  %v1575_v52 = vpop.f32.mrf.mxu1  ;;  %v1616_v50 = vpop.f32.mrf.mxu0 }
 0x77f   :  { %v1690_v51 = vrot.slane %v1689_v40, 2  ;;  %v1717_v53 = vadd.f32 %v1716_v42, %v1712_v33  ;;  %v1702_v55 = vrot.slane %v1701_v44, 2  ;;  %v1729_v56 = vadd.f32 %v1728_v45, %v1714_v21 }
 0x780   :  { %v1695_v57 = vadd.f32 %v1694_v30, %v4259_v31  ;;  %v1722_v58 = vrot.slane %v1713_v47, 4  ;;  %v1707_v59 = vadd.f32 %v1706_v48, %v4262_v24  ;;  %v1734_v60 = vrot.slane %v1715_v49, 4 }
 0x781   :  { %v1718_v61 = vrot.slane %v1717_v53, 2  ;;  %v1730_v62 = vrot.slane %v1729_v56, 2  ;;  %v1691_v3 = vadd.f32 %v1690_v51, %v1689_v40  ;;  %v1703_v5 = vadd.f32 %v1702_v55, %v1701_v44  ;;  %v3050_v51 = vld [vmem:[%s4599_s16 + $0x70] ss:$8 sps:$4 sm:$0xff]  }
 0x782   :  { %v1696_v63 = vrot.slane %v1695_v57, 2  ;;  %v1723_v1 = vadd.f32 %v1722_v58, %v1713_v47  ;;  %v1708_v0 = vrot.slane %v1707_v59, 2  ;;  %v1735_v2 = vadd.f32 %v1734_v60, %v1715_v49  ;;  %v3053_v55 = vld [vmem:[%s4599_s16 + $0x170] ss:$8 sps:$4 sm:$0xff]   ;;  %v3058_v60 = vld [vmem:[%s4599_s16 + $0x64] ss:$8 sps:$4 sm:$0xff]  }
 0x783   :  { %v1719_v4 = vadd.f32 %v1718_v61, %v1717_v53  ;;  %v1731_v6 = vadd.f32 %v1730_v62, %v1729_v56  ;;  %v1692_v17 = vrot.slane %v1691_v3, 1  ;;  %v1704_v29 = vrot.slane %v1703_v5, 1  ;;  %v3052_v53 = vld [vmem:[%s4599_s16 + $0x74] ss:$8 sps:$4 sm:$0xff]   ;;  %v3059_v61 = vld [vmem:[%s4599_s16 + $0x160] ss:$8 sps:$4 sm:$0xff]  }
 0x784   :  { %v1697_v7 = vadd.f32 %v1696_v63, %v1695_v57  ;;  %v1724_v8 = vrot.slane %v1723_v1, 2  ;;  %v1709_v9 = vadd.f32 %v1708_v0, %v1707_v59  ;;  %v1736_v10 = vrot.slane %v1735_v2, 2  ;;  %v3055_v56 = vld [vmem:[%s4599_s16 + $0x174] ss:$8 sps:$4 sm:$0xff]   ;;  %2470 = vmatprep.subr.bf16.mxu1 %v3052_v53  ;;  %v3056_v59 = vld [vmem:[%s4599_s16 + $0x60] ss:$8 sps:$4 sm:$0xff]  }
 0x785   :  { %v1720_v34 = vrot.slane %v1719_v4, 1  ;;  %v1732_v11 = vrot.slane %v1731_v6, 1  ;;  %v1693_v28 = vadd.f32 %v1692_v17, %v1691_v3  ;;  %v1705_v20 = vadd.f32 %v1704_v29, %v1703_v5  ;;  %2511 = vmatprep.subr.bf16.mxu0 %v3055_v56  ;;  %v3061_v63 = vld [vmem:[%s4599_s16 + $0x164] ss:$8 sps:$4 sm:$0xff]   ;;  %v3064_v3 = vld [vmem:[%s4599_s16 + $0x54] ss:$8 sps:$4 sm:$0xff]  }
 0x786   :  { %v1698_v13 = vrot.slane %v1697_v7, 1  ;;  %v1725_v14 = vadd.f32 %v1724_v8, %v1723_v1  ;;  %v1710_v16 = vrot.slane %v1709_v9, 1  ;;  %v1737_v12 = vadd.f32 %v1736_v10, %v1735_v2  ;;  %v1618_v1 = vld [vmem:[%s4596_s13] sm:$0x1]  ;;  %v3062_v2 = vld [vmem:[%s4599_s16 + $0x50] ss:$8 sps:$4 sm:$0xff]  }
 0x787   :  { %v1721_v18 = vadd.f32 %v1720_v34, %v1719_v4  ;;  %v1733_v37 = vadd.f32 %v1732_v11, %v1731_v6  ;;  %v3065_v4 = vld [vmem:[%s4599_s16 + $0x150] ss:$8 sps:$4 sm:$0xff]   ;;  %v1619_v6 = vld [vmem:[%s4597_s14] sm:$0x1]  ;;  %v3070_v10 = vld [vmem:[%s4599_s16 + $0x44] ss:$8 sps:$4 sm:$0xff]  }
 0x788   :  { %v1726_v54 = vrot.slane %v1725_v14, 1  ;;  %v1738_v19 = vrot.slane %v1737_v12, 1  ;;  %v1699_v41 = vadd.f32 %v1698_v13, %v1697_v7  ;;  %v1711_v46 = vadd.f32 %v1710_v16, %v1709_v9  ;;  %v3068_v9 = vld [vmem:[%s4599_s16 + $0x40] ss:$8 sps:$4 sm:$0xff]   ;;  %v3073_v13 = vld [vmem:[%s4599_s16 + $0x144] ss:$8 sps:$4 sm:$0xff]  }
 0x789   :  { %v1740_v35 = vsel %vm620_vm14, %v1693_v28, %v1721_v18  ;;  %v1742_v21 = vsel %vm620_vm14, %v1705_v20, %v1733_v37  ;;  %v3071_v34 = vld [vmem:[%s4599_s16 + $0x140] ss:$8 sps:$4 sm:$0xff]   ;;  %v3074_v16 = vld [vmem:[%s4599_s16 + $0x30] ss:$8 sps:$4 sm:$0xff]   ;;  %v3079_v29 = vld [vmem:[%s4599_s16 + $0x134] ss:$8 sps:$4 sm:$0xff]  }
 0x78a   :  { %v1727_v43 = vadd.f32 %v1726_v54, %v1725_v14  ;;  %v1739_v22 = vadd.f32 %v1738_v19, %v1737_v12  ;;  %v3076_v12 = vld [vmem:[%s4599_s16 + $0x34] ss:$8 sps:$4 sm:$0xff]   ;;  %v3077_v17 = vld [vmem:[%s4599_s16 + $0x130] ss:$8 sps:$4 sm:$0xff]   ;;  %v3080_v54 = vld [vmem:[%s4599_s16 + $0x20] ss:$8 sps:$4 sm:$0xff]  }
 0x78b   :  { %v3082_v19 = vld [vmem:[%s4599_s16 + $0x24] ss:$8 sps:$4 sm:$0xff]   ;;  %v3083_v18 = vld [vmem:[%s4599_s16 + $0x120] ss:$8 sps:$4 sm:$0xff]   ;;  %v3124_v56 = vld [vmem:[%s4599_s16 + $0xb4] ss:$8 sps:$4 sm:$0xff]  }
 0x78c   :  { %v1741_v32 = vsel %vm620_vm14, %v1699_v41, %v1727_v43  ;;  %v1743_v33 = vsel %vm620_vm14, %v1711_v46, %v1739_v22  ;;  %v3085_v37 = vld [vmem:[%s4599_s16 + $0x124] ss:$8 sps:$4 sm:$0xff]   ;;  %v3086_v41 = vld [vmem:[%s4599_s16 + $0x10] ss:$8 sps:$4 sm:$0xff]   ;;  %v3088_v43 = vld [vmem:[%s4599_s16 + $0x14] ss:$8 sps:$4 sm:$0xff]  }
 0x78d   :  { %1808 = vmatprep.mubr.f32.mxu1 %v1741_v32  ;;  %1878 = vmatprep.mubr.f32.mxu0 %v1743_v33  ;;  %v3089_v46 = vld [vmem:[%s4599_s16 + $0x110] ss:$8 sps:$4 sm:$0xff]   ;;  %v3091_v22 = vld [vmem:[%s4599_s16 + $0x114] ss:$8 sps:$4 sm:$0xff]   ;;  %v3092_v28 = vld [vmem:[%s4599_s16] ss:$8 sps:$4 sm:$0xff]  }
 0x78e   :  { %1809 = vmatmul.mubr.f32.vlgmr.msra.gmra.mxu1 %v1740_v35  ;;  %1879 = vmatmul.mubr.f32.vlgmr.msra.gmra.mxu0 %v1742_v21  ;;  %v3094_v20 = vld [vmem:[%s4599_s16 + $0x4] ss:$8 sps:$4 sm:$0xff]   ;;  %v3095_v32 = vld [vmem:[%s4599_s16 + $0x100] ss:$8 sps:$4 sm:$0xff]   ;;  %v3098_v35 = vld [vmem:[%s4599_s16 + $0xf0] ss:$8 sps:$4 sm:$0xff]  }
 0x78f   :  { %2471 = vmatpush1.bf16.msra.mxu1 %v3050_v51  ;;  %2512 = vmatpush1.bf16.msra.mxu0 %v3053_v55  ;;  %v3097_v33 = vld [vmem:[%s4599_s16 + $0x104] ss:$8 sps:$4 sm:$0xff]   ;;  %v3100_v21 = vld [vmem:[%s4599_s16 + $0xf4] ss:$8 sps:$4 sm:$0xff]   ;;  %v3119_v51 = vld [vmem:[%s4599_s16 + $0x1c0] ss:$8 sps:$4 sm:$0xff]  }
 0x790   :  { %2472 = vmatprep.subr.bf16.mxu1 %v3058_v60  ;;  %2513 = vmatprep.subr.bf16.mxu0 %v3061_v63  ;;  %v3121_v53 = vld [vmem:[%s4599_s16 + $0x1c4] ss:$8 sps:$4 sm:$0xff]   ;;  %v3122_v55 = vld [vmem:[%s4599_s16 + $0xb0] ss:$8 sps:$4 sm:$0xff]   ;;  %v3136_v63 = vld [vmem:[%s4599_s16 + $0x94] ss:$8 sps:$4 sm:$0xff]  }
 0x791   :  { %v3130_v60 = vld [vmem:[%s4599_s16 + $0xa4] ss:$8 sps:$4 sm:$0xff]  }
 0x793   :  { %2473 = vmatpush1.bf16.msra.mxu1 %v3056_v59  ;;  %2514 = vmatpush1.bf16.msra.mxu0 %v3059_v61  ;;  %v3128_v59 = vld [vmem:[%s4599_s16 + $0xa0] ss:$8 sps:$4 sm:$0xff]  }
 0x794   :  { %2474 = vmatprep.subr.bf16.mxu1 %v3064_v3  ;;  %v3131_v61 = vld [vmem:[%s4599_s16 + $0x1a0] ss:$8 sps:$4 sm:$0xff]   ;;  %v3142_v3 = vld [vmem:[%s4599_s16 + $0x84] ss:$8 sps:$4 sm:$0xff]  }
 0x797   :  { %2475 = vmatpush1.bf16.msra.mxu1 %v3062_v2  ;;  %v3137_v2 = vld [vmem:[%s4599_s16 + $0x190] ss:$8 sps:$4 sm:$0xff]  }
 0x798   :  { %2476 = vmatprep.subr.bf16.mxu1 %v3070_v10 }
 0x79b   :  { %2477 = vmatpush1.bf16.msra.mxu1 %v3068_v9 }
 0x79c   :  { %2478 = vmatprep.subr.bf16.mxu1 %v3076_v12 }
 0x79f   :  { %2479 = vmatpush1.bf16.msra.mxu1 %v3074_v16 }
 0x7a0   :  { %2480 = vmatprep.subr.bf16.mxu1 %v3082_v19 }
 0x7a3   :  { %2481 = vmatpush1.bf16.msra.mxu1 %v3080_v54 }
 0x7a4   :  { %2482 = vmatprep.subr.bf16.mxu1 %v3088_v43 }
 0x7a7   :  { %2483 = vmatpush1.bf16.msra.mxu1 %v3086_v41 }
 0x7a8   :  { %2484 = vmatprep.subr.bf16.mxu1 %v3094_v20 }
 0x7ab   :  { %2485 = vmatpush1.bf16.msra.mxu1 %v3092_v28 }
 0x7ac   :  { %2486 = vmatprep.subr.bf16.mxu1 %v3100_v21 }
 0x7af   :  { %2487 = vmatpush2.bf16.msra.mxu1 %v3098_v35 }
 0x84e   :  { %v2816_v38 = vpop.f32.mrf.mxu1  ;;  %v2851_v39 = vpop.f32.mrf.mxu0 }
 0x850   :  { %v2817_v40 = vpop.f32.mrf.mxu1  ;;  %v2852_v42 = vpop.f32.mrf.mxu0 }
 0x851   :  { %v2818_v44 = vadd.f32 %v2817_v40, %v2816_v38  ;;  %v2853_v45 = vadd.f32 %v2852_v42, %v2851_v39  ;;  %v3101_v38 = vld [vmem:[%s4599_s16 + $0x1f0] ss:$8 sps:$4 sm:$0xff]   ;;  %v3103_v39 = vld [vmem:[%s4599_s16 + $0x1f4] ss:$8 sps:$4 sm:$0xff]   ;;  %v3104_v40 = vld [vmem:[%s4599_s16 + $0xe0] ss:$8 sps:$4 sm:$0xff]  }
 0x852   :  { %v3106_v42 = vld [vmem:[%s4599_s16 + $0xe4] ss:$8 sps:$4 sm:$0xff]  }
 0x853   :  { %v1881_v30 = vadd.f32 %v2853_v45, %v2818_v44  ;;  %v3107_v44 = vld [vmem:[%s4599_s16 + $0x1e0] ss:$8 sps:$4 sm:$0xff]   ;;  %v3109_v45 = vld [vmem:[%s4599_s16 + $0x1e4] ss:$8 sps:$4 sm:$0xff]   ;;  %2488 = vmatprep.subr.bf16.mxu1 %v3106_v42 }
 0x854   :  { %2489 = vmatpush2.bf16.msra.mxu1 %v3104_v40 }
 0x855   :  { %v1884_v47 = vmul.f32 0.0078125, %v1881_v30  ;;  %v3110_v30 = vld [vmem:[%s4599_s16 + $0xd0] ss:$8 sps:$4 sm:$0xff]  }
 0x857   :  { %v1885_v48 = vmul.f32 %v1884_v47, %v1884_v47 }
 0x859   :  { %v1887_v49 = vrot.slane %v1885_v48, 7  ;;  %v3113_v48 = vld [vmem:[%s4599_s16 + $0x1d0] ss:$8 sps:$4 sm:$0xff]  }
 0x85b   :  { %v1889_v52 = vsub.f32 %v1884_v47, %v1887_v49  ;;  %v3115_v49 = vld [vmem:[%s4599_s16 + $0x1d4] ss:$8 sps:$4 sm:$0xff]  }
 0x85d   :  { %v1890_v50 = vadd.f32 1e-05, %v1889_v52  ;;  %v3116_v52 = vld [vmem:[%s4599_s16 + $0xc0] ss:$8 sps:$4 sm:$0xff]  }
 0x85f   :  { %3152 = vrsqrt.f32 %v1890_v50  ;;  %v3118_v50 = vld [vmem:[%s4599_s16 + $0xc4] ss:$8 sps:$4 sm:$0xff]  }
 0x86c   :  { %v3153_v57 = vpop.eup %3152 }
 0x86d   :  { %v1899_v58 = vrot.slane %v3153_v57, %v3639_v25  ;;  %v3125_v57 = vld [vmem:[%s4599_s16 + $0x1b0] ss:$8 sps:$4 sm:$0xff]  }
 0x86f   :  { %v1900_v62 = vcombine.high %v1899_v58, %v1899_v58  ;;  %v3127_v58 = vld [vmem:[%s4599_s16 + $0x1b4] ss:$8 sps:$4 sm:$0xff]  }
 0x871   :  { %v1907_v0 = vrot.slane %v1900_v62, %v3639_v25  ;;  %v3067_v25 = vld [vmem:[%s4599_s16 + $0x154] ss:$8 sps:$4 sm:$0xff]   ;;  %v3133_v62 = vld [vmem:[%s4599_s16 + $0x1a4] ss:$8 sps:$4 sm:$0xff]  }
 0x872   :  { %2515 = vmatprep.subr.bf16.mxu0 %v3067_v25  ;;  %v3145_v25 = vld [vmem:[%s4599_s16 + $0x184] ss:$8 sps:$4 sm:$0xff]  }
 0x873   :  { %v4316_v5 = vmul.f32 %v1907_v0, %v1618_v1  ;;  %2516 = vmatpush1.bf16.msra.mxu0 %v3065_v4  ;;  %v3139_v1 = vld [vmem:[%s4599_s16 + $0x194] ss:$8 sps:$4 sm:$0xff]   ;;  %v3134_v0 = vld [vmem:[%s4599_s16 + $0x90] ss:$8 sps:$4 sm:$0xff]   ;;  %v3140_v4 = vld [vmem:[%s4599_s16 + $0x80] ss:$8 sps:$4 sm:$0xff]  }
 0x874   :  { %2517 = vmatprep.subr.bf16.mxu0 %v3073_v13 }
 0x875   :  { %v1910_v7 = vmul.f32 %v4316_v5, %v1884_v47  ;;  %v4327_v8 = vrot.slane %v4316_v5, %v3659_v36  ;;  %v3112_v47 = vld [vmem:[%s4599_s16 + $0xd4] ss:$8 sps:$4 sm:$0xff]  }
 0x876   :  { %2490 = vmatprep.subr.bf16.mxu1 %v3112_v47 }
 0x877   :  { %v4338_v11 = vsub.f32 %v1619_v6, %v1910_v7  ;;  %1920 = vrot.lane.b32.xlu0 %v4327_v8, %s3183_s10  ;;  %1917 = vrot.lane.b32.xlu1 %v4327_v8, %s3187_s27  ;;  %v3143_v6 = vld [vmem:[%s4599_s16 + $0x180] ss:$8 sps:$4 sm:$0xff]  }
 0x878   :  { %2518 = vmatpush1.bf16.msra.mxu0 %v3071_v34  ;;  %2491 = vmatpush2.bf16.msra.mxu1 %v3110_v30 }
 0x879   :  { %v4348_v14 = vrot.slane %v4338_v11, %v3659_v36  ;;  %2519 = vmatprep.subr.bf16.mxu0 %v3079_v29  ;;  %2492 = vmatprep.subr.bf16.mxu1 %v3118_v50 }
 0x87b   :  { %1923 = vrot.lane.b32.xlu1 %v4327_v8, %s3188_s12  ;;  %1990 = vrot.lane.b32.xlu0 %v4348_v14, %s3187_s27 }
 0x87c   :  { %2520 = vmatpush1.bf16.msra.mxu0 %v3077_v17  ;;  %2493 = vmatpush2.bf16.msra.mxu1 %v3116_v52 }
 0x87d   :  { %2521 = vmatprep.subr.bf16.mxu0 %v3085_v37  ;;  %2494 = vmatprep.subr.bf16.mxu1 %v3124_v56 }
 0x87f   :  { %1926 = vrot.lane.b32.xlu1 %v4327_v8, %s3180_s20  ;;  %1993 = vrot.lane.b32.xlu0 %v4348_v14, %s3183_s10  ;;  %s3189_s10 = smov 40  }
 0x880   :  { %2522 = vmatpush1.bf16.msra.mxu0 %v3083_v18  ;;  %2495 = vmatpush2.bf16.msra.mxu1 %v3122_v55 }
 0x881   :  { %2523 = vmatprep.subr.bf16.mxu0 %v3091_v22  ;;  %2496 = vmatprep.subr.bf16.mxu1 %v3130_v60 }
 0x883   :  { %1929 = vrot.lane.b32.xlu1 %v4327_v8, %s3189_s10  ;;  %1996 = vrot.lane.b32.xlu0 %v4348_v14, %s3188_s12 }
 0x884   :  { %2524 = vmatpush1.bf16.msra.mxu0 %v3089_v46  ;;  %2497 = vmatpush2.bf16.msra.mxu1 %v3128_v59 }
 0x885   :  { %2525 = vmatprep.subr.bf16.mxu0 %v3097_v33  ;;  %2498 = vmatprep.subr.bf16.mxu1 %v3136_v63 }
 0x887   :  { %1932 = vrot.lane.b32.xlu1 %v4327_v8, %s3184_s24  ;;  %1999 = vrot.lane.b32.xlu0 %v4348_v14, %s3180_s20  ;;  %s3190_s20 = smov 56  }
 0x888   :  { %2526 = vmatpush1.bf16.msra.mxu0 %v3095_v32  ;;  %2499 = vmatpush2.bf16.msra.mxu1 %v3134_v0 }
 0x889   :  { %2527 = vmatprep.subr.bf16.mxu0 %v3103_v39  ;;  %2500 = vmatprep.subr.bf16.mxu1 %v3142_v3 }
 0x88b   :  { %1935 = vrot.lane.b32.xlu1 %v4327_v8, %s3190_s20  ;;  %2002 = vrot.lane.b32.xlu0 %v4348_v14, %s3189_s10 }
 0x88c   :  { %2528 = vmatpush2.bf16.msra.mxu0 %v3101_v38  ;;  %2501 = vmatpush2.bf16.msra.mxu1 %v3140_v4 }
 0x88d   :  { %2529 = vmatprep.subr.bf16.mxu0 %v3109_v45 }
 0x88f   :  { %1938 = vrot.lane.b32.xlu1 %v4327_v8, %s3181_s23  ;;  %2005 = vrot.lane.b32.xlu0 %v4348_v14, %s3184_s24  ;;  %s3191_s24 = smov 72  }
 0x890   :  { %2530 = vmatpush2.bf16.msra.mxu0 %v3107_v44 }
 0x891   :  { %2531 = vmatprep.subr.bf16.mxu0 %v3115_v49 }
 0x893   :  { %1941 = vrot.lane.b32.xlu1 %v4327_v8, %s3191_s24  ;;  %2008 = vrot.lane.b32.xlu0 %v4348_v14, %s3190_s20 }
 0x894   :  { %2532 = vmatpush2.bf16.msra.mxu0 %v3113_v48 }
 0x895   :  { %2533 = vmatprep.subr.bf16.mxu0 %v3121_v53 }
 0x897   :  { %1944 = vrot.lane.b32.xlu1 %v4327_v8, %s3185_s5  ;;  %2011 = vrot.lane.b32.xlu0 %v4348_v14, %s3181_s23 }
 0x898   :  { %2534 = vmatpush2.bf16.msra.mxu0 %v3119_v51 }
 0x899   :  { %2535 = vmatprep.subr.bf16.mxu0 %v3127_v58 }
 0x89b   :  { %1947 = vrot.lane.b32.xlu1 %v4327_v8, %s3192_s22  ;;  %2014 = vrot.lane.b32.xlu0 %v4348_v14, %s3191_s24 }
 0x89c   :  { %2536 = vmatpush2.bf16.msra.mxu0 %v3125_v57 }
 0x89d   :  { %2537 = vmatprep.subr.bf16.mxu0 %v3133_v62 }
 0x89f   :  { %1950 = vrot.lane.b32.xlu1 %v4327_v8, %s3178_s28  ;;  %2017 = vrot.lane.b32.xlu0 %v4348_v14, %s3185_s5  ;;  %s3193_s5 = smov 104  }
 0x8a0   :  { %2538 = vmatpush2.bf16.msra.mxu0 %v3131_v61 }
 0x8a1   :  { %2539 = vmatprep.subr.bf16.mxu0 %v3139_v1 }
 0x8a3   :  { %1953 = vrot.lane.b32.xlu1 %v4327_v8, %s3193_s5  ;;  %2020 = vrot.lane.b32.xlu0 %v4348_v14, %s3192_s22 }
 0x8a4   :  { %2540 = vmatpush2.bf16.msra.mxu0 %v3137_v2 }
 0x8a5   :  { %2541 = vmatprep.subr.bf16.mxu0 %v3145_v25 }
 0x8a7   :  { %1956 = vrot.lane.b32.xlu1 %v4327_v8, %s3186_s19  ;;  %2023 = vrot.lane.b32.xlu0 %v4348_v14, %s3178_s28 }
 0x8a8   :  { %2542 = vmatpush2.bf16.msra.mxu0 %v3143_v6 }
 0x8ab   :  { %1959 = vrot.lane.b32.xlu1 %v4327_v8, %s3194_s2  ;;  %2026 = vrot.lane.b32.xlu0 %v4348_v14, %s3193_s5 }
 0x8af   :  { %2029 = vrot.lane.b32.xlu1 %v4348_v14, %s3186_s19  ;;  %2032 = vrot.lane.b32.xlu0 %v4348_v14, %s3194_s2 }
 0x8b3   :  { %2553 = vrot.lane.b32.xlu1 %v3533_v15, %s3181_s23  ;;  %s3195_s23 = smov [#allocation2]  }
 0x8b4   :  { %s2566_s19 = sshll.u32 %s3195_s23, 4  ;;  %s2567_s19 = int_to_ptr.vmem [resolvable:$true] %s2566_s19 }
 0x8b5   :  { %p3159_p1 = scmp.lt.s32.totalorder %s2567_s19, %s2567_s19 }
 0x8e9   :  { %v1921_v7 = vpop.permute.xlu0 %1920  ;;  %v1918_v9 = vpop.permute.xlu1 %1917 }
 0x8ea   :  { %v1963_v28 = vsel %vm1962_vm5, %v4316_v5, %v1918_v9 }
 0x8eb   :  { %v1964_v20 = vsel %vm1092_vm1, %v1963_v28, %v1921_v7 }
 0x8ed   :  { %v1924_v10 = vpop.permute.xlu1 %1923  ;;  %v1991_v34 = vpop.permute.xlu0 %1990 }
 0x8ee   :  { %v1966_v35 = vsel %vm1965_vm6, %v1964_v20, %v1924_v10  ;;  %v2035_v39 = vsel %vm1962_vm5, %v4338_v11, %v1991_v34 }
 0x8f1   :  { %v1927_v13 = vpop.permute.xlu1 %1926  ;;  %v1994_v16 = vpop.permute.xlu0 %1993 }
 0x8f2   :  { %v1967_v21 = vsel %vm445_vm12, %v1966_v35, %v1927_v13  ;;  %v2036_v44 = vsel %vm1092_vm1, %v2035_v39, %v1994_v16 }
 0x8f5   :  { %v1930_v12 = vpop.permute.xlu1 %1929  ;;  %v1997_v17 = vpop.permute.xlu0 %1996 }
 0x8f6   :  { %v1969_v38 = vsel %vm1968_vm7, %v1967_v21, %v1930_v12  ;;  %v2037_v30 = vsel %vm1965_vm6, %v2036_v44, %v1997_v17 }
 0x8f9   :  { %v1933_v8 = vpop.permute.xlu1 %1932  ;;  %v2000_v29 = vpop.permute.xlu0 %1999 }
 0x8fa   :  { %v1970_v40 = vsel %vm1095_vm2, %v1969_v38, %v1933_v8  ;;  %v2038_v48 = vsel %vm445_vm12, %v2037_v30, %v2000_v29 }
 0x8fd   :  { %v1936_v54 = vpop.permute.xlu1 %1935  ;;  %v2003_v19 = vpop.permute.xlu0 %2002 }
 0x8fe   :  { %v1972_v45 = vsel %vm1971_vm8, %v1970_v40, %v1936_v54  ;;  %v2039_v11 = vsel %vm1968_vm7, %v2038_v48, %v2003_v19 }
 0x901   :  { %v1939_v18 = vpop.permute.xlu1 %1938  ;;  %v2006_v37 = vpop.permute.xlu0 %2005 }
 0x902   :  { %v1973_v47 = vsel %vm98_vm0, %v1972_v45, %v1939_v18  ;;  %v2040_v53 = vsel %vm1095_vm2, %v2039_v11, %v2006_v37 }
 0x905   :  { %v1942_v41 = vpop.permute.xlu1 %1941  ;;  %v2009_v43 = vpop.permute.xlu0 %2008 }
 0x906   :  { %v1975_v49 = vsel %vm1974_vm9, %v1973_v47, %v1942_v41  ;;  %v2041_v56 = vsel %vm1971_vm8, %v2040_v53, %v2009_v43 }
 0x909   :  { %v1945_v14 = vpop.permute.xlu1 %1944  ;;  %v2012_v46 = vpop.permute.xlu0 %2011 }
 0x90a   :  { %v1976_v52 = vsel %vm1098_vm3, %v1975_v49, %v1945_v14  ;;  %v2042_v58 = vsel %vm98_vm0, %v2041_v56, %v2012_v46 }
 0x90d   :  { %v1948_v15 = vpop.permute.xlu1 %1947  ;;  %v2015_v22 = vpop.permute.xlu0 %2014 }
 0x90e   :  { %v1978_v55 = vsel %vm1977_vm10, %v1976_v52, %v1948_v15  ;;  %v2043_v60 = vsel %vm1974_vm9, %v2042_v58, %v2015_v22 }
 0x911   :  { %v1951_v32 = vpop.permute.xlu1 %1950  ;;  %v2018_v33 = vpop.permute.xlu0 %2017 }
 0x912   :  { %v1979_v57 = vsel %vm736_vm15, %v1978_v55, %v1951_v32  ;;  %v2044_v1 = vsel %vm1098_vm3, %v2043_v60, %v2018_v33 }
 0x915   :  { %v1954_v42 = vpop.permute.xlu1 %1953  ;;  %v2021_v5 = vpop.permute.xlu0 %2020 }
 0x916   :  { %v1981_v59 = vsel %vm1980_vm11, %v1979_v57, %v1954_v42  ;;  %v2045_v2 = vsel %vm1977_vm10, %v2044_v1, %v2021_v5 }
 0x919   :  { %v1957_v50 = vpop.permute.xlu1 %1956  ;;  %v2024_v51 = vpop.permute.xlu0 %2023 }
 0x91a   :  { %v1982_v61 = vsel %vm1101_vm4, %v1981_v59, %v1957_v50  ;;  %v2046_v4 = vsel %vm736_vm15, %v2045_v2, %v2024_v51 }
 0x91d   :  { %v1960_v62 = vpop.permute.xlu1 %1959  ;;  %v2027_v63 = vpop.permute.xlu0 %2026 }
 0x91e   :  { %v1984_v0 = vsel %vm1983_vm13, %v1982_v61, %v1960_v62  ;;  %v2047_v25 = vsel %vm1980_vm11, %v2046_v4, %v2027_v63 }
 0x91f   :  { %v2053_v3 = vrot.slane %v1984_v0, %v3659_v36 }
 0x921   :  { %v2030_v6 = vpop.permute.xlu1 %2029  ;;  %v2033_v7 = vpop.permute.xlu0 %2032  ;;  %v2055_v34 = vmul.f32 %v2053_v3, %v4259_v31  ;;  %v2057_v16 = vmul.f32 %v2053_v3, %v4262_v24  ;;  %v2054_v12 = vmul.f32 %v2053_v3, %v4247_v26  ;;  %v2056_v17 = vmul.f32 %v2053_v3, %v4250_v27  ;;  %v2138_v26 = vld [vmem:[%s4600_s17] sm:$0x3]  ;;  %s3154_s17 = scalar_lea.vmem %s2567_s19, 256 }
 0x922   :  { %v2048_v9 = vsel %vm1101_vm4, %v2047_v25, %v2030_v6  ;;  %v2146_v27 = vsub.s32 1, %v3443_v23  ;;  %v2143_v24 = vrot.slane %v2138_v26, %v3659_v36  ;;  %p3155_p0 = scmp.ne.s32.totalorder %s2567_s19, %s3154_s17  ;;  %p3160_p2 = scmp.lt.s32.totalorder %s3154_s17, %s3154_s17 }
 0x923   :  { %v2049_v10 = vsel %vm1983_vm13, %v2048_v9, %v2033_v7 }
 0x924   :  { %v2061_v13 = vrot.slane %v2049_v10, %v3659_v36  ;;  %v2147_v22 = vrot.slane %v2138_v26, %v2146_v27  ;;  %p3161_p3 = por %p3160_p2, %p3159_p1 }
 0x925   :  { %v2554_v42 = vpop.permute.xlu1 %2553 }
 0x926   :  { %v2063_v8 = vadd.f32 %v2061_v13, %v2055_v34  ;;  %v2065_v29 = vadd.f32 %v2061_v13, %v2057_v16  ;;  %v2062_v54 = vadd.f32 %v2061_v13, %v2054_v12  ;;  %v2064_v19 = vadd.f32 %v2061_v13, %v2056_v17  ;;  %p3162_p4 = pnand %p3161_p3, %p3155_p0 }
 0x928   :  { %v2067_v18 = vmax.f32 %v2063_v8, 0.0  ;;  %v2069_v37 = vmax.f32 %v2065_v29, 0.0  ;;  %v2066_v41 = vmax.f32 %v2062_v54, 0.0  ;;  %v2068_v43 = vmax.f32 %v2064_v19, 0.0 }
 0x92a   :  { %v2071_v14 = vpack.c.bf16 %v2067_v18, %v2067_v18  ;;  %v2073_v46 = vpack.c.bf16 %v2069_v37, %v2069_v37  ;;  %v2070_v15 = vpack.c.bf16 %v2066_v41, %v2066_v41  ;;  %v2072_v31 = vpack.c.bf16 %v2068_v43, %v2068_v43 }
 0x92c   :  { %2502 = vmatprep.mubr.bf16.mxu1 %v2071_v14  ;;  %2543 = vmatprep.mubr.bf16.mxu0 %v2073_v46 }
 0x92d   :  { %2503 = vmatmul.mubr.bf16.vlgmr.msra.gmra.mxu1 %v2070_v15  ;;  %2544 = vmatmul.mubr.bf16.vlgmr.msra.gmra.mxu0 %v2072_v31 }
 0x9ed   :  { %v2504_v28 = vpop.f32.mrf.mxu1  ;;  %v2545_v20 = vpop.f32.mrf.mxu0 }
 0x9ee   :  { %v2505_v32 = vadd.f32 %v2504_v28, %v2143_v24 }
 0x9ef   :  { %v2506_v33 = vpop.f32.mrf.mxu1  ;;  %v2547_v35 = vpop.f32.mrf.mxu0 }
 0x9f0   :  { %v2546_v21 = vadd.f32 %v2545_v20, %v2505_v32  ;;  %v2507_v38 = vadd.f32 %v2506_v33, %v2147_v22 }
 0x9f1   :  { %v2508_v39 = vpop.f32.mrf.mxu1  ;;  %v2549_v40 = vpop.f32.mrf.mxu0 }
 0x9f2   :  { %2558 = vst [vmem:[#allocation2] sm:$0xff] %v2546_v21  ;;  %v2548_v5 = vadd.f32 %v2547_v35, %v2507_v38 }
 0x9f3   :  { %v2509_v44 = vpop.f32.mrf.mxu1  ;;  %v2550_v45 = vpop.f32.mrf.mxu0 }
 0x9f4   :  { %v2556_v23 = vsel %vm98_vm0, %v2548_v5, %v2554_v42 }
 0x9f5   :  { %v2557_v36 = vsel %vm736_vm15, %v2556_v23, %v2554_v42 }
 0x9f6   :  { %2559 = vst [vmem:[#allocation2 + $0x8] sm:$0xff] %v2557_v36 }
 0x9f7   :  { %3165 = shalt.err (!%p3162_p4)
}
 0x9f8   :  { %2569 = dma.vmem_to_hbm [thread:$0]  %s2567_s19, 256, %s4601_s18, [#allocation3]  }
 0x9f9   :  { %3174 = dma.done.wait [#allocation3], 256  }
 0x9fa   :  { %3175 = vsyncadd [#allocation3], 4294967040 }
 0x9fb   :  { %2573 = vsyncpa [#allocation3], 1 }

</bundles_post_ra>
